<compile_context>
chip_gen: v5e
topology: v5e:2x2
jax: 0.10.0
libtpu: 0.0.40
codegen_flags: <defaults>
</compile_context>

<pallas_src>
import functools

import jax
import jax.numpy as jnp
from jax import lax
from jax.experimental import pallas as pl
from jax.experimental.pallas import tpu as pltpu


def _corr_shift_kernel(x_ref, t_ref, o_ref, xpad_ref, shift_ref, *, H, S_TILE, CWP):
    x3 = x_ref[...]                                   # (S_TILE, H, CWP) raw f32 rows
    x2 = x3.reshape(S_TILE * H, CWP)                  # free sublane regroup (H % 8 == 0)

    # F.normalize over the C*W axis: x * rsqrt(max(||x||^2, eps^2)) -- EUP rsqrt,
    # no per-element divide (eps^2 = (1e-12)^2 keeps F.normalize semantics).
    ss = jnp.sum(x2 * x2, axis=-1, keepdims=True)
    xn2 = (x2 * lax.rsqrt(jnp.maximum(ss, 1e-24))).astype(jnp.bfloat16)

    # Compact Gram on the MXU (bf16 in, f32 acc):  g[s*H + j, k] = <xn[s, j], tn[k]>
    g = jnp.dot(xn2, t_ref[...], preferred_element_type=jnp.float32)  # (S_TILE*H, H)
    g3 = g.reshape(S_TILE, H, H)

    # Averaged superdiagonals (== F.conv1d(..., padding=H-1)[:, 0, :H] / range(1, H)):
    #   avg[s, d] = (1/(H-d)) * sum_{j : j + d < H} g3[s, j, j + d]
    # H static lane-shift+adds on the tiny zero-padded Gram; no H^2-lane intermediate.
    gpad3 = jnp.concatenate([g3, jnp.zeros_like(g3)], axis=-1)        # (S_TILE, H, 2H)
    acc = gpad3[:, 0, 0:H]
    for j in range(1, H):
        acc = acc + gpad3[:, j, j:j + H]
    d_iota = lax.broadcasted_iota(jnp.int32, (S_TILE, H), 1)
    avg = acc / (H - d_iota).astype(jnp.float32)

    # shift = argmax_d avg[s, d]; largest-d tie-break == first occurrence in
    # t = H-1-d space, matching torch.argmax.  Clip guards the NaN / -1 corner.
    cmax = jnp.max(avg, axis=-1, keepdims=True)
    shift = jnp.max(jnp.where(avg == cmax, d_iota, -1), axis=-1, keepdims=True)
    shift_ref[...] = jnp.clip(shift, 0, H - 1)                        # (S_TILE, 1) int32

    # out[s, h, :] = x[s, h + shift_s, :] for h + shift_s < H, else 0  -- pure data
    # movement: zero-pad the rows once, then one dynamic sublane slice per sample.
    xpad_ref[:, :H, :] = x3
    xpad_ref[:, H:, :] = jnp.zeros((S_TILE, H, CWP), x3.dtype)
    for s in range(S_TILE):
        sh = shift_ref[s, 0]
        o_ref[s, :, :] = xpad_ref[s, pl.ds(sh, H), :]


def _pick_s_tile(B, S, H, CWP):
    """Largest divisor of S whose per-step VMEM footprint fits a conservative budget."""
    # per step: 2x double-buffered input block + 2x output block + (2H)-row pad scratch
    per_s = (2 + 2 + 2) * H * CWP * 4
    budget = 32 * 1024 * 1024          # conservative: fits v7x's 64 MiB physical VMEM
    cap = int(max(1, min(S, budget // per_s, 32)))
    s_tile = max(d for d in range(1, cap + 1) if S % d == 0)
    # keep >= 2 grid steps so v7x's two TensorCores both get work
    while s_tile > 1 and B * (S // s_tile) < 2:
        s_tile = max(d for d in range(1, s_tile) if S % d == 0)
    return s_tile


@jax.jit
def correlation_transformer(inp, tgt):
    """inp: (B, S, C, H, W) float32, tgt: (B, C, H, W) float32 -> (B, S, C, H, W)."""
    B, S, C, H, W = inp.shape
    assert H % 8 == 0, "H must be a multiple of 8 (free in-kernel sublane regrouping)"
    CW = C * W
    CWP = -(-CW // 128) * 128          # lane-dense: pad C*W up to a multiple of 128
    S_TILE = _pick_s_tile(B, S, H, CWP)

    # channel-last row slabs (== torch's permute+flatten); zero-pad the C*W axis.
    X = jnp.transpose(inp, (0, 1, 3, 2, 4)).reshape(B, S, H, CW)
    T = jnp.transpose(tgt, (0, 2, 1, 3)).reshape(B, H, CW)
    if CWP != CW:
        X = jnp.pad(X, ((0, 0), (0, 0), (0, 0), (0, CWP - CW)))
        T = jnp.pad(T, ((0, 0), (0, 0), (0, CWP - CW)))

    # Target: L2-normalise ONCE in the wrapper; (B, CWP, H) bf16 feeds the compact Gram.
    Tn = T * lax.rsqrt(jnp.maximum(jnp.sum(T * T, axis=-1, keepdims=True), 1e-24))
    TnT = jnp.swapaxes(Tn, 1, 2).astype(jnp.bfloat16)                 # (B, CWP, H)

    blk = S_TILE * H * CWP * 4
    vmem_need = 2 * blk + 2 * blk + 2 * blk + 2 * (CWP * H * 2) + (1 << 16)
    vmem_limit = int(min(48 * 1024 * 1024, max(16 * 1024 * 1024, 2 * vmem_need)))

    out_rows = pl.pallas_call(
        functools.partial(_corr_shift_kernel, H=H, S_TILE=S_TILE, CWP=CWP),
        out_shape=jax.ShapeDtypeStruct((B, S, H, CWP), inp.dtype),
        grid_spec=pltpu.PrefetchScalarGridSpec(
            num_scalar_prefetch=0,
            grid=(B, S // S_TILE),
            in_specs=[
                pl.BlockSpec((None, S_TILE, H, CWP), lambda b, si: (b, si, 0, 0)),
                pl.BlockSpec((None, CWP, H), lambda b, si: (b, 0, 0)),
            ],
            out_specs=pl.BlockSpec((None, S_TILE, H, CWP), lambda b, si: (b, si, 0, 0)),
            scratch_shapes=[
                pltpu.VMEM((S_TILE, 2 * H, CWP), inp.dtype),   # zero-padded rows
                pltpu.VMEM((S_TILE, 1), jnp.int32),            # per-sample shift
            ],
        ),
        compiler_params=pltpu.CompilerParams(
            dimension_semantics=("parallel", "parallel"),
            vmem_limit_bytes=vmem_limit),
        cost_estimate=pl.CostEstimate(
            flops=int(2 * B * S * H * H * CWP),
            transcendentals=int(B * S * H),
            bytes_accessed=int(8 * B * S * H * CWP + 2 * B * CWP * H)),
    )(X, TnT)

    # strip lane padding, back to NCHW
    return out_rows[..., :CW].reshape(B, S, H, C, W).transpose(0, 1, 3, 2, 4)


def _reference(inp, tgt):
    """Pure-JAX reference of the same (intended) semantics.

    The Gram inputs are normalised the same way (rsqrt, eps^2 clamp) and cast to
    bf16 like the kernel's MXU inputs so the argmax decision matches; the final
    shifted rows are taken from the exact f32 input."""
    B, S, C, H, W = inp.shape
    X = jnp.transpose(inp, (0, 1, 3, 2, 4)).reshape(B, S, H, C * W)
    T = jnp.transpose(tgt, (0, 2, 1, 3)).reshape(B, H, C * W)
    Xn = X * lax.rsqrt(jnp.maximum(jnp.sum(X * X, axis=-1, keepdims=True), 1e-24))
    Tn = T * lax.rsqrt(jnp.maximum(jnp.sum(T * T, axis=-1, keepdims=True), 1e-24))
    G = jnp.einsum('bsjc,bkc->bsjk', Xn.astype(jnp.bfloat16), Tn.astype(jnp.bfloat16),
                   preferred_element_type=jnp.float32)
    corr = jnp.stack(
        [jnp.sum(jnp.diagonal(G, offset=H - 1 - t, axis1=2, axis2=3), axis=-1)
         / float(t + 1) for t in range(H)], axis=-1)              # (B, S, H)
    overlap = jnp.argmax(corr, axis=-1)                           # (B, S)
    shift = (H - 1) - overlap
    src = jnp.arange(H)[None, None, :] + shift[:, :, None]        # (B, S, H)
    valid = (src < H)[..., None]
    idx = jnp.broadcast_to(jnp.clip(src, 0, H - 1)[..., None], X.shape)
    rows = jnp.where(valid, jnp.take_along_axis(X, idx, axis=2), 0.0)
    return rows.reshape(B, S, H, C, W).transpose(0, 1, 3, 2, 4)


if __name__ == "__main__":
    key = jax.random.PRNGKey(0)
    B, S, C, H, W = 2, 8, 4, 16, 16
    k1, k2 = jax.random.split(key)
    inp = jax.random.normal(k1, (B, S, C, H, W), dtype=jnp.float32)
    tgt = jax.random.normal(k2, (B, C, H, W), dtype=jnp.float32)

    out = jax.block_until_ready(correlation_transformer(inp, tgt))
    ref = jax.block_until_ready(_reference(inp, tgt))

    assert out.shape == inp.shape and out.dtype == inp.dtype
    err = float(jnp.max(jnp.abs(out - ref)))
    assert err < 1e-4, err
    print("KERNEL_OK")
</pallas_src>

<mosaic_0001>
module attributes {stable_mosaic.version = 11 : i64} {
  func.func @_corr_shift_kernel(%arg0: i32, %arg1: i32, %arg2: memref<1x8x16x128xf32, #tpu.memory_space<vmem>>, %arg3: memref<1x128x16xbf16, #tpu.memory_space<vmem>>, %arg4: memref<1x8x16x128xf32, #tpu.memory_space<vmem>>, %arg5: memref<8x32x128xf32, #tpu.memory_space<vmem>>, %arg6: memref<8x1xi32, #tpu.memory_space<vmem>>) attributes {dimension_semantics = [#tpu.dimension_semantics<parallel>, #tpu.dimension_semantics<parallel>], iteration_bounds = array<i64: 2, 1>, scalar_prefetch = 0 : i64, scratch_operands = 2 : i64, tpu.core_type = #tpu.core_type<tc>, window_params = [{transform_indices = @transform_0, window_bounds = array<i64: 1, 8, 16, 128>}, {transform_indices = @transform_1, window_bounds = array<i64: 1, 128, 16>}, {transform_indices = @transform_2, window_bounds = array<i64: 1, 8, 16, 128>}]} {
    %c0 = arith.constant 0 : index
    %c0_0 = arith.constant 0 : index
    %c0_1 = arith.constant 0 : index
    %c0_2 = arith.constant 0 : index
    %0 = vector.load %arg2[%c0, %c0_0, %c0_1, %c0_2] : memref<1x8x16x128xf32, #tpu.memory_space<vmem>>, vector<1x8x16x128xf32>
    %1 = vector.shape_cast %0 : vector<1x8x16x128xf32> to vector<8x16x128xf32>
    %2 = vector.shape_cast %1 : vector<8x16x128xf32> to vector<128x128xf32>
    %3 = arith.mulf %2, %2 : vector<128x128xf32>
    %cst = arith.constant dense<0.000000e+00> : vector<128xf32>
    %4 = vector.multi_reduction <add>, %3, %cst [1] : vector<128x128xf32> to vector<128xf32>
    %5 = vector.shape_cast %4 : vector<128xf32> to vector<128x1xf32>
    %cst_3 = arith.constant 1.000000e-24 : f32
    %6 = vector.broadcast %cst_3 : f32 to vector<128x1xf32>
    %7 = arith.maximumf %5, %6 : vector<128x1xf32>
    %8 = math.rsqrt %7 : vector<128x1xf32>
    %9 = vector.broadcast %8 : vector<128x1xf32> to vector<128x128xf32>
    %10 = arith.mulf %2, %9 : vector<128x128xf32>
    %11 = arith.truncf %10 : vector<128x128xf32> to vector<128x128xbf16>
    %c0_4 = arith.constant 0 : index
    %c0_5 = arith.constant 0 : index
    %c0_6 = arith.constant 0 : index
    %12 = vector.load %arg3[%c0_4, %c0_5, %c0_6] : memref<1x128x16xbf16, #tpu.memory_space<vmem>>, vector<1x128x16xbf16>
    %13 = vector.shape_cast %12 : vector<1x128x16xbf16> to vector<128x16xbf16>
    %cst_7 = arith.constant dense<0.000000e+00> : vector<128x16xf32>
    %14 = tpu.matmul %11, %13, %cst_7 {dimension_numbers = #tpu.dot_dimension_numbers<[1], [0], [0], [1], [0, 0, 1, 1], [], []>} : vector<128x128xbf16>, vector<128x16xbf16>, vector<128x16xf32> -> vector<128x16xf32>
    %15 = vector.shape_cast %14 : vector<128x16xf32> to vector<8x16x16xf32>
    %cst_8 = arith.constant 0.000000e+00 : f32
    %16 = vector.broadcast %cst_8 : f32 to vector<8x16x16xf32>
    %17 = tpu.concatenate %15, %16 in 2 : vector<8x16x16xf32>, vector<8x16x16xf32> -> vector<8x16x32xf32>
    %18 = vector.extract_strided_slice %17 {offsets = [0, 0, 0], sizes = [8, 1, 16], strides = [1, 1, 1]} : vector<8x16x32xf32> to vector<8x1x16xf32>
    %19 = vector.shape_cast %18 : vector<8x1x16xf32> to vector<8x16xf32>
    %20 = vector.extract_strided_slice %17 {offsets = [0, 1, 1], sizes = [8, 1, 16], strides = [1, 1, 1]} : vector<8x16x32xf32> to vector<8x1x16xf32>
    %21 = vector.shape_cast %20 : vector<8x1x16xf32> to vector<8x16xf32>
    %22 = arith.addf %19, %21 : vector<8x16xf32>
    %23 = vector.extract_strided_slice %17 {offsets = [0, 2, 2], sizes = [8, 1, 16], strides = [1, 1, 1]} : vector<8x16x32xf32> to vector<8x1x16xf32>
    %24 = vector.shape_cast %23 : vector<8x1x16xf32> to vector<8x16xf32>
    %25 = arith.addf %22, %24 : vector<8x16xf32>
    %26 = vector.extract_strided_slice %17 {offsets = [0, 3, 3], sizes = [8, 1, 16], strides = [1, 1, 1]} : vector<8x16x32xf32> to vector<8x1x16xf32>
    %27 = vector.shape_cast %26 : vector<8x1x16xf32> to vector<8x16xf32>
    %28 = arith.addf %25, %27 : vector<8x16xf32>
    %29 = vector.extract_strided_slice %17 {offsets = [0, 4, 4], sizes = [8, 1, 16], strides = [1, 1, 1]} : vector<8x16x32xf32> to vector<8x1x16xf32>
    %30 = vector.shape_cast %29 : vector<8x1x16xf32> to vector<8x16xf32>
    %31 = arith.addf %28, %30 : vector<8x16xf32>
    %32 = vector.extract_strided_slice %17 {offsets = [0, 5, 5], sizes = [8, 1, 16], strides = [1, 1, 1]} : vector<8x16x32xf32> to vector<8x1x16xf32>
    %33 = vector.shape_cast %32 : vector<8x1x16xf32> to vector<8x16xf32>
    %34 = arith.addf %31, %33 : vector<8x16xf32>
    %35 = vector.extract_strided_slice %17 {offsets = [0, 6, 6], sizes = [8, 1, 16], strides = [1, 1, 1]} : vector<8x16x32xf32> to vector<8x1x16xf32>
    %36 = vector.shape_cast %35 : vector<8x1x16xf32> to vector<8x16xf32>
    %37 = arith.addf %34, %36 : vector<8x16xf32>
    %38 = vector.extract_strided_slice %17 {offsets = [0, 7, 7], sizes = [8, 1, 16], strides = [1, 1, 1]} : vector<8x16x32xf32> to vector<8x1x16xf32>
    %39 = vector.shape_cast %38 : vector<8x1x16xf32> to vector<8x16xf32>
    %40 = arith.addf %37, %39 : vector<8x16xf32>
    %41 = vector.extract_strided_slice %17 {offsets = [0, 8, 8], sizes = [8, 1, 16], strides = [1, 1, 1]} : vector<8x16x32xf32> to vector<8x1x16xf32>
    %42 = vector.shape_cast %41 : vector<8x1x16xf32> to vector<8x16xf32>
    %43 = arith.addf %40, %42 : vector<8x16xf32>
    %44 = vector.extract_strided_slice %17 {offsets = [0, 9, 9], sizes = [8, 1, 16], strides = [1, 1, 1]} : vector<8x16x32xf32> to vector<8x1x16xf32>
    %45 = vector.shape_cast %44 : vector<8x1x16xf32> to vector<8x16xf32>
    %46 = arith.addf %43, %45 : vector<8x16xf32>
    %47 = vector.extract_strided_slice %17 {offsets = [0, 10, 10], sizes = [8, 1, 16], strides = [1, 1, 1]} : vector<8x16x32xf32> to vector<8x1x16xf32>
    %48 = vector.shape_cast %47 : vector<8x1x16xf32> to vector<8x16xf32>
    %49 = arith.addf %46, %48 : vector<8x16xf32>
    %50 = vector.extract_strided_slice %17 {offsets = [0, 11, 11], sizes = [8, 1, 16], strides = [1, 1, 1]} : vector<8x16x32xf32> to vector<8x1x16xf32>
    %51 = vector.shape_cast %50 : vector<8x1x16xf32> to vector<8x16xf32>
    %52 = arith.addf %49, %51 : vector<8x16xf32>
    %53 = vector.extract_strided_slice %17 {offsets = [0, 12, 12], sizes = [8, 1, 16], strides = [1, 1, 1]} : vector<8x16x32xf32> to vector<8x1x16xf32>
    %54 = vector.shape_cast %53 : vector<8x1x16xf32> to vector<8x16xf32>
    %55 = arith.addf %52, %54 : vector<8x16xf32>
    %56 = vector.extract_strided_slice %17 {offsets = [0, 13, 13], sizes = [8, 1, 16], strides = [1, 1, 1]} : vector<8x16x32xf32> to vector<8x1x16xf32>
    %57 = vector.shape_cast %56 : vector<8x1x16xf32> to vector<8x16xf32>
    %58 = arith.addf %55, %57 : vector<8x16xf32>
    %59 = vector.extract_strided_slice %17 {offsets = [0, 14, 14], sizes = [8, 1, 16], strides = [1, 1, 1]} : vector<8x16x32xf32> to vector<8x1x16xf32>
    %60 = vector.shape_cast %59 : vector<8x1x16xf32> to vector<8x16xf32>
    %61 = arith.addf %58, %60 : vector<8x16xf32>
    %62 = vector.extract_strided_slice %17 {offsets = [0, 15, 15], sizes = [8, 1, 16], strides = [1, 1, 1]} : vector<8x16x32xf32> to vector<8x1x16xf32>
    %63 = vector.shape_cast %62 : vector<8x1x16xf32> to vector<8x16xf32>
    %64 = arith.addf %61, %63 : vector<8x16xf32>
    %65 = tpu.iota {dimensions = array<i32: 1>} : vector<8x16xi32>
    %c16_i32 = arith.constant 16 : i32
    %66 = vector.broadcast %c16_i32 : i32 to vector<8x16xi32>
    %67 = arith.subi %66, %65 : vector<8x16xi32>
    %68 = arith.sitofp %67 : vector<8x16xi32> to vector<8x16xf32>
    %69 = arith.divf %64, %68 : vector<8x16xf32>
    %cst_9 = arith.constant dense<0xFF800000> : vector<8xf32>
    %70 = vector.multi_reduction <maximumf>, %69, %cst_9 [1] : vector<8x16xf32> to vector<8xf32>
    %71 = vector.shape_cast %70 : vector<8xf32> to vector<8x1xf32>
    %72 = vector.broadcast %71 : vector<8x1xf32> to vector<8x16xf32>
    %73 = arith.cmpf oeq, %69, %72 : vector<8x16xf32>
    %c-1_i32 = arith.constant -1 : i32
    %74 = vector.broadcast %c-1_i32 : i32 to vector<8x16xi32>
    %75 = arith.select %73, %65, %74 : vector<8x16xi1>, vector<8x16xi32>
    %cst_10 = arith.constant dense<-2147483648> : vector<8xi32>
    %76 = vector.multi_reduction <maxsi>, %75, %cst_10 [1] : vector<8x16xi32> to vector<8xi32>
    %77 = vector.shape_cast %76 : vector<8xi32> to vector<8x1xi32>
    %c0_i32 = arith.constant 0 : i32
    %c15_i32 = arith.constant 15 : i32
    %78 = vector.broadcast %c0_i32 : i32 to vector<8x1xi32>
    %79 = arith.maxsi %78, %77 : vector<8x1xi32>
    %80 = vector.broadcast %c15_i32 : i32 to vector<8x1xi32>
    %81 = arith.minsi %80, %79 : vector<8x1xi32>
    %c0_11 = arith.constant 0 : index
    %c0_12 = arith.constant 0 : index
    %82 = vector.load %arg6[%c0_11, %c0_12] : memref<8x1xi32, #tpu.memory_space<vmem>>, vector<8x1xi32>
    tpu.vector_store %arg6[%c0_11, %c0_12], %81 {strides = array<i32>} : memref<8x1xi32, #tpu.memory_space<vmem>>, vector<8x1xi32>,
    %c0_13 = arith.constant 0 : index
    %c0_14 = arith.constant 0 : index
    %c0_15 = arith.constant 0 : index
    %83 = vector.load %arg5[%c0_13, %c0_14, %c0_15] : memref<8x32x128xf32, #tpu.memory_space<vmem>>, vector<8x16x128xf32>
    tpu.vector_store %arg5[%c0_13, %c0_14, %c0_15], %1 {strides = array<i32>} : memref<8x32x128xf32, #tpu.memory_space<vmem>>, vector<8x16x128xf32>,
    %cst_16 = arith.constant 0.000000e+00 : f32
    %84 = vector.broadcast %cst_16 : f32 to vector<8x16x128xf32>
    %c0_17 = arith.constant 0 : index
    %c16 = arith.constant 16 : index
    %c0_18 = arith.constant 0 : index
    %85 = vector.load %arg5[%c0_17, %c16, %c0_18] : memref<8x32x128xf32, #tpu.memory_space<vmem>>, vector<8x16x128xf32>
    tpu.vector_store %arg5[%c0_17, %c16, %c0_18], %84 {strides = array<i32>} : memref<8x32x128xf32, #tpu.memory_space<vmem>>, vector<8x16x128xf32>,
    %c0_19 = arith.constant 0 : index
    %c0_20 = arith.constant 0 : index
    %86 = vector.load %arg6[%c0_19, %c0_20] : memref<8x1xi32, #tpu.memory_space<vmem>>, vector<1x1xi32>
    %87 = vector.extract %86[0, 0] : i32 from vector<1x1xi32>
    %c0_21 = arith.constant 0 : index
    %88 = arith.index_cast %87 : i32 to index
    %c0_22 = arith.constant 0 : index
    %89 = vector.load %arg5[%c0_21, %88, %c0_22] : memref<8x32x128xf32, #tpu.memory_space<vmem>>, vector<1x16x128xf32>
    %90 = vector.shape_cast %89 : vector<1x16x128xf32> to vector<16x128xf32>
    %c0_23 = arith.constant 0 : index
    %c0_24 = arith.constant 0 : index
    %c0_25 = arith.constant 0 : index
    %c0_26 = arith.constant 0 : index
    %91 = vector.load %arg4[%c0_23, %c0_24, %c0_25, %c0_26] : memref<1x8x16x128xf32, #tpu.memory_space<vmem>>, vector<1x1x16x128xf32>
    %92 = vector.shape_cast %91 : vector<1x1x16x128xf32> to vector<16x128xf32>
    %93 = vector.shape_cast %90 : vector<16x128xf32> to vector<1x1x16x128xf32>
    tpu.vector_store %arg4[%c0_23, %c0_24, %c0_25, %c0_26], %93 {strides = array<i32>} : memref<1x8x16x128xf32, #tpu.memory_space<vmem>>, vector<1x1x16x128xf32>,
    %c1 = arith.constant 1 : index
    %c0_27 = arith.constant 0 : index
    %94 = vector.load %arg6[%c1, %c0_27] : memref<8x1xi32, #tpu.memory_space<vmem>>, vector<1x1xi32>
    %95 = vector.extract %94[0, 0] : i32 from vector<1x1xi32>
    %c1_28 = arith.constant 1 : index
    %96 = arith.index_cast %95 : i32 to index
    %c0_29 = arith.constant 0 : index
    %97 = vector.load %arg5[%c1_28, %96, %c0_29] : memref<8x32x128xf32, #tpu.memory_space<vmem>>, vector<1x16x128xf32>
    %98 = vector.shape_cast %97 : vector<1x16x128xf32> to vector<16x128xf32>
    %c0_30 = arith.constant 0 : index
    %c1_31 = arith.constant 1 : index
    %c0_32 = arith.constant 0 : index
    %c0_33 = arith.constant 0 : index
    %99 = vector.load %arg4[%c0_30, %c1_31, %c0_32, %c0_33] : memref<1x8x16x128xf32, #tpu.memory_space<vmem>>, vector<1x1x16x128xf32>
    %100 = vector.shape_cast %99 : vector<1x1x16x128xf32> to vector<16x128xf32>
    %101 = vector.shape_cast %98 : vector<16x128xf32> to vector<1x1x16x128xf32>
    tpu.vector_store %arg4[%c0_30, %c1_31, %c0_32, %c0_33], %101 {strides = array<i32>} : memref<1x8x16x128xf32, #tpu.memory_space<vmem>>, vector<1x1x16x128xf32>,
    %c2 = arith.constant 2 : index
    %c0_34 = arith.constant 0 : index
    %102 = vector.load %arg6[%c2, %c0_34] : memref<8x1xi32, #tpu.memory_space<vmem>>, vector<1x1xi32>
    %103 = vector.extract %102[0, 0] : i32 from vector<1x1xi32>
    %c2_35 = arith.constant 2 : index
    %104 = arith.index_cast %103 : i32 to index
    %c0_36 = arith.constant 0 : index
    %105 = vector.load %arg5[%c2_35, %104, %c0_36] : memref<8x32x128xf32, #tpu.memory_space<vmem>>, vector<1x16x128xf32>
    %106 = vector.shape_cast %105 : vector<1x16x128xf32> to vector<16x128xf32>
    %c0_37 = arith.constant 0 : index
    %c2_38 = arith.constant 2 : index
    %c0_39 = arith.constant 0 : index
    %c0_40 = arith.constant 0 : index
    %107 = vector.load %arg4[%c0_37, %c2_38, %c0_39, %c0_40] : memref<1x8x16x128xf32, #tpu.memory_space<vmem>>, vector<1x1x16x128xf32>
    %108 = vector.shape_cast %107 : vector<1x1x16x128xf32> to vector<16x128xf32>
    %109 = vector.shape_cast %106 : vector<16x128xf32> to vector<1x1x16x128xf32>
    tpu.vector_store %arg4[%c0_37, %c2_38, %c0_39, %c0_40], %109 {strides = array<i32>} : memref<1x8x16x128xf32, #tpu.memory_space<vmem>>, vector<1x1x16x128xf32>,
    %c3 = arith.constant 3 : index
    %c0_41 = arith.constant 0 : index
    %110 = vector.load %arg6[%c3, %c0_41] : memref<8x1xi32, #tpu.memory_space<vmem>>, vector<1x1xi32>
    %111 = vector.extract %110[0, 0] : i32 from vector<1x1xi32>
    %c3_42 = arith.constant 3 : index
    %112 = arith.index_cast %111 : i32 to index
    %c0_43 = arith.constant 0 : index
    %113 = vector.load %arg5[%c3_42, %112, %c0_43] : memref<8x32x128xf32, #tpu.memory_space<vmem>>, vector<1x16x128xf32>
    %114 = vector.shape_cast %113 : vector<1x16x128xf32> to vector<16x128xf32>
    %c0_44 = arith.constant 0 : index
    %c3_45 = arith.constant 3 : index
    %c0_46 = arith.constant 0 : index
    %c0_47 = arith.constant 0 : index
    %115 = vector.load %arg4[%c0_44, %c3_45, %c0_46, %c0_47] : memref<1x8x16x128xf32, #tpu.memory_space<vmem>>, vector<1x1x16x128xf32>
    %116 = vector.shape_cast %115 : vector<1x1x16x128xf32> to vector<16x128xf32>
    %117 = vector.shape_cast %114 : vector<16x128xf32> to vector<1x1x16x128xf32>
    tpu.vector_store %arg4[%c0_44, %c3_45, %c0_46, %c0_47], %117 {strides = array<i32>} : memref<1x8x16x128xf32, #tpu.memory_space<vmem>>, vector<1x1x16x128xf32>,
    %c4 = arith.constant 4 : index
    %c0_48 = arith.constant 0 : index
    %118 = vector.load %arg6[%c4, %c0_48] : memref<8x1xi32, #tpu.memory_space<vmem>>, vector<1x1xi32>
    %119 = vector.extract %118[0, 0] : i32 from vector<1x1xi32>
    %c4_49 = arith.constant 4 : index
    %120 = arith.index_cast %119 : i32 to index
    %c0_50 = arith.constant 0 : index
    %121 = vector.load %arg5[%c4_49, %120, %c0_50] : memref<8x32x128xf32, #tpu.memory_space<vmem>>, vector<1x16x128xf32>
    %122 = vector.shape_cast %121 : vector<1x16x128xf32> to vector<16x128xf32>
    %c0_51 = arith.constant 0 : index
    %c4_52 = arith.constant 4 : index
    %c0_53 = arith.constant 0 : index
    %c0_54 = arith.constant 0 : index
    %123 = vector.load %arg4[%c0_51, %c4_52, %c0_53, %c0_54] : memref<1x8x16x128xf32, #tpu.memory_space<vmem>>, vector<1x1x16x128xf32>
    %124 = vector.shape_cast %123 : vector<1x1x16x128xf32> to vector<16x128xf32>
    %125 = vector.shape_cast %122 : vector<16x128xf32> to vector<1x1x16x128xf32>
    tpu.vector_store %arg4[%c0_51, %c4_52, %c0_53, %c0_54], %125 {strides = array<i32>} : memref<1x8x16x128xf32, #tpu.memory_space<vmem>>, vector<1x1x16x128xf32>,
    %c5 = arith.constant 5 : index
    %c0_55 = arith.constant 0 : index
    %126 = vector.load %arg6[%c5, %c0_55] : memref<8x1xi32, #tpu.memory_space<vmem>>, vector<1x1xi32>
    %127 = vector.extract %126[0, 0] : i32 from vector<1x1xi32>
    %c5_56 = arith.constant 5 : index
    %128 = arith.index_cast %127 : i32 to index
    %c0_57 = arith.constant 0 : index
    %129 = vector.load %arg5[%c5_56, %128, %c0_57] : memref<8x32x128xf32, #tpu.memory_space<vmem>>, vector<1x16x128xf32>
    %130 = vector.shape_cast %129 : vector<1x16x128xf32> to vector<16x128xf32>
    %c0_58 = arith.constant 0 : index
    %c5_59 = arith.constant 5 : index
    %c0_60 = arith.constant 0 : index
    %c0_61 = arith.constant 0 : index
    %131 = vector.load %arg4[%c0_58, %c5_59, %c0_60, %c0_61] : memref<1x8x16x128xf32, #tpu.memory_space<vmem>>, vector<1x1x16x128xf32>
    %132 = vector.shape_cast %131 : vector<1x1x16x128xf32> to vector<16x128xf32>
    %133 = vector.shape_cast %130 : vector<16x128xf32> to vector<1x1x16x128xf32>
    tpu.vector_store %arg4[%c0_58, %c5_59, %c0_60, %c0_61], %133 {strides = array<i32>} : memref<1x8x16x128xf32, #tpu.memory_space<vmem>>, vector<1x1x16x128xf32>,
    %c6 = arith.constant 6 : index
    %c0_62 = arith.constant 0 : index
    %134 = vector.load %arg6[%c6, %c0_62] : memref<8x1xi32, #tpu.memory_space<vmem>>, vector<1x1xi32>
    %135 = vector.extract %134[0, 0] : i32 from vector<1x1xi32>
    %c6_63 = arith.constant 6 : index
    %136 = arith.index_cast %135 : i32 to index
    %c0_64 = arith.constant 0 : index
    %137 = vector.load %arg5[%c6_63, %136, %c0_64] : memref<8x32x128xf32, #tpu.memory_space<vmem>>, vector<1x16x128xf32>
    %138 = vector.shape_cast %137 : vector<1x16x128xf32> to vector<16x128xf32>
    %c0_65 = arith.constant 0 : index
    %c6_66 = arith.constant 6 : index
    %c0_67 = arith.constant 0 : index
    %c0_68 = arith.constant 0 : index
    %139 = vector.load %arg4[%c0_65, %c6_66, %c0_67, %c0_68] : memref<1x8x16x128xf32, #tpu.memory_space<vmem>>, vector<1x1x16x128xf32>
    %140 = vector.shape_cast %139 : vector<1x1x16x128xf32> to vector<16x128xf32>
    %141 = vector.shape_cast %138 : vector<16x128xf32> to vector<1x1x16x128xf32>
    tpu.vector_store %arg4[%c0_65, %c6_66, %c0_67, %c0_68], %141 {strides = array<i32>} : memref<1x8x16x128xf32, #tpu.memory_space<vmem>>, vector<1x1x16x128xf32>,
    %c7 = arith.constant 7 : index
    %c0_69 = arith.constant 0 : index
    %142 = vector.load %arg6[%c7, %c0_69] : memref<8x1xi32, #tpu.memory_space<vmem>>, vector<1x1xi32>
    %143 = vector.extract %142[0, 0] : i32 from vector<1x1xi32>
    %c7_70 = arith.constant 7 : index
    %144 = arith.index_cast %143 : i32 to index
    %c0_71 = arith.constant 0 : index
    %145 = vector.load %arg5[%c7_70, %144, %c0_71] : memref<8x32x128xf32, #tpu.memory_space<vmem>>, vector<1x16x128xf32>
    %146 = vector.shape_cast %145 : vector<1x16x128xf32> to vector<16x128xf32>
    %c0_72 = arith.constant 0 : index
    %c7_73 = arith.constant 7 : index
    %c0_74 = arith.constant 0 : index
    %c0_75 = arith.constant 0 : index
    %147 = vector.load %arg4[%c0_72, %c7_73, %c0_74, %c0_75] : memref<1x8x16x128xf32, #tpu.memory_space<vmem>>, vector<1x1x16x128xf32>
    %148 = vector.shape_cast %147 : vector<1x1x16x128xf32> to vector<16x128xf32>
    %149 = vector.shape_cast %146 : vector<16x128xf32> to vector<1x1x16x128xf32>
    tpu.vector_store %arg4[%c0_72, %c7_73, %c0_74, %c0_75], %149 {strides = array<i32>} : memref<1x8x16x128xf32, #tpu.memory_space<vmem>>, vector<1x1x16x128xf32>,
    return
  }
  func.func @transform_0(%arg0: i32, %arg1: i32) -> (i32, i32, i32, i32) {
    %c0_i32 = arith.constant 0 : i32
    %c0_i32_0 = arith.constant 0 : i32
    %c0_i32_1 = arith.constant 0 : i32
    return %arg0, %arg1, %c0_i32, %c0_i32_0 : i32, i32, i32, i32
  }
  func.func @transform_1(%arg0: i32, %arg1: i32) -> (i32, i32, i32) {
    %c0_i32 = arith.constant 0 : i32
    %c0_i32_0 = arith.constant 0 : i32
    %c0_i32_1 = arith.constant 0 : i32
    return %arg0, %c0_i32, %c0_i32_0 : i32, i32, i32
  }
  func.func @transform_2(%arg0: i32, %arg1: i32) -> (i32, i32, i32, i32) {
    %c0_i32 = arith.constant 0 : i32
    %c0_i32_0 = arith.constant 0 : i32
    %c0_i32_1 = arith.constant 0 : i32
    return %arg0, %arg1, %c0_i32, %c0_i32_0 : i32, i32, i32, i32
  }
}

</mosaic_0001>

<bundles_post_ra>
// kernel: correlation_transformer.1
= control target key start
LH: loop header
LB: loop body
LE: loop exit
PB: predicated region body
PF: predicated region fallthrough
CT: control target
= control target key end

     0   :  { %s1814_s9 = smov 0   ;;  %s1816_s10 = smov 0   ;;  %s2520_s0 = inlined_call_operand.vmem [shape: f32[2,8,16,128], index: 0, kind: input, shape index: {}]   ;;  %s2521_s1 = inlined_call_operand.vmem [shape: bf16[2,128,16], index: 1, kind: input, shape index: {}]   ;;  %s2522_s2 = inlined_call_operand.vmem [shape: f32[2,8,16,128], index: 2, kind: output, shape index: {}]  }
   0x1   :  { %s1818_s11 = smov 0  }
   0x2 LB: > { %s24_s12 = sadd.s32 1, %s1777_s10  ;;  %p1565_p0 = scmp.ge.s32.totalorder %s1781_s11, 1  ;;  %s1781_s11 = sphi %s1818_s11, %s12_s11   ;;  %s1777_s10 = sphi %s1816_s10, %s2552_s10   ;;  %s1773_s9 = sphi %s1814_s9, %s2551_s9  }
   0x3   : > { %p26_p1 = scmp.ge.s32.totalorder %s24_s12, 2  ;;  %p144_p2 = scmp.lt.s32.totalorder %s1781_s11, 3 }
   0x5   : > { %s2554_s12 = smov (%p26_p1, %s24_s12), 0  ;;  %p145_p3 = pnand %p1565_p0, %p144_p2 }
   0x6   : > { %p182_p4 = scmp.lt.s32.totalorder (!%p145_p3), %s1773_s9, 1  ;;  %s1783_s21 = smov (!%p145_p3), 127  }
   0x7   : > { %148 = sbr.rel (%p145_p3) target bundleno = 1192 (0x4a8), region = 28  ;;  %s1784_s22 = smov (!%p145_p3), 125  }
   0x8   : > { %s1785_s23 = smov (!%p145_p3), 126   ;;  %s1786_s24 = smov (!%p145_p3), 124  }
   0x9   : > { %s1787_s25 = smov (!%p145_p3), 121   ;;  %s1788_s26 = smov (!%p145_p3), 123  }
   0xa   : > { %s1789_s27 = smov (!%p145_p3), 122   ;;  %s1790_s28 = smov (!%p145_p3), 118  }
   0xb   : > { %s1791_s29 = smov (!%p145_p3), 120   ;;  %s1792_s30 = smov (!%p145_p3), 115  }
   0xc   : > { %s2556_s9 = smov (!%p182_p4, %s1773_s9), 1  ;;  %s1793_s3 = smov 119  }
   0xd   : > { %s1634_s13 = sshll.u32 %s2556_s9, 7  ;;  %s1635_s17 = sshll.u32 %s2556_s9, 6 }
   0xe   : > { %s1840_s16 = scalar_lea.vmem %s2520_s0, %s1634_s13  ;;  %s1930_s20 = scalar_lea.vmem %s2521_s1, %s1635_s17 }
   0xf   : > { %v1843_v0 = vld [vmem:[%s1840_s16 + $0x40] sm:$0xff]  ;;  %v1858_v5 = vld [vmem:[%s1840_s16 + $0x48] sm:$0xff]  ;;  %v1887_v14 = vld [vmem:[%s1840_s16 + $0x50] sm:$0xff]  ;;  %s1794_s4 = smov 117   ;;  %s1795_s5 = smov 116  }
  0x10   : > { %v1846_v1 = vld [vmem:[%s1840_s16] sm:$0xff]  ;;  %v232_v2 = vmul.f32 %v1843_v0, %v1843_v0  ;;  %1344 = vst [vmem:[#allocation2 + $0x80] sm:$0xff] %v1843_v0  ;;  %v1864_v7 = vld [vmem:[%s1840_s16 + $0x8] sm:$0xff]  ;;  %v233_v11 = vmul.f32 %v1858_v5, %v1858_v5  ;;  %v1891_v15 = vld [vmem:[%s1840_s16 + $0x58] sm:$0xff]  ;;  %v234_v22 = vmul.f32 %v1887_v14, %v1887_v14  ;;  %s1796_s6 = smov 114   ;;  %s1797_s7 = smov 113  }
  0x11   : > { %v224_v3 = vmul.f32 %v1846_v1, %v1846_v1  ;;  %v1854_v4 = vld [vmem:[%s1840_s16 + $0x60] sm:$0xff]  ;;  %1336 = vst [vmem:[#allocation2] sm:$0xff] %v1846_v1  ;;  %v1872_v9 = vld [vmem:[%s1840_s16 + $0x68] sm:$0xff]  ;;  %v225_v12 = vmul.f32 %v1864_v7, %v1864_v7  ;;  %v1895_v16 = vld [vmem:[%s1840_s16 + $0x10] sm:$0xff]  ;;  %v235_v23 = vmul.f32 %v1891_v15, %v1891_v15  ;;  %s2493_s15 = scalar_lea.vmem %s2522_s2, %s1634_s13 }
  0x12   : > { %v236_v6 = vmul.f32 %v1854_v4, %v1854_v4  ;;  %256 = vadd.xlane.f32.xlu0 %v232_v2  ;;  %1345 = vst [vmem:[#allocation2 + $0x88] sm:$0xff] %v1858_v5  ;;  %v1869_v8 = vld [vmem:[%s1840_s16 + $0x20] sm:$0xff]  ;;  %v1876_v10 = vld [vmem:[%s1840_s16 + $0x28] sm:$0xff]  ;;  %v237_v13 = vmul.f32 %v1872_v9, %v1872_v9  ;;  %v1899_v17 = vld [vmem:[%s1840_s16 + $0x70] sm:$0xff]  ;;  %v226_v24 = vmul.f32 %v1895_v16, %v1895_v16 }
  0x13   : > { %240 = vadd.xlane.f32.xlu1 %v224_v3  ;;  %1337 = vst [vmem:[#allocation2 + $0x8] sm:$0xff] %v1864_v7  ;;  %v1903_v18 = vld [vmem:[%s1840_s16 + $0x18] sm:$0xff]  ;;  %v228_v20 = vmul.f32 %v1869_v8, %v1869_v8  ;;  %v229_v21 = vmul.f32 %v1876_v10, %v1876_v10  ;;  %v238_v26 = vmul.f32 %v1899_v17, %v1899_v17  ;;  %v1937_v30 = vld [vmem:[%s1840_s16 + $0x30] sm:$0xff]  ;;  %v1642_v34 = vld [vmem:[%s1930_s20 + $0x28] sm:$0xff] }
  0x14   : > { %264 = vadd.xlane.f32.xlu2 %v236_v6  ;;  %1348 = vst [vmem:[#allocation2 + $0xc0] sm:$0xff] %v1854_v4  ;;  %v1907_v19 = vld [vmem:[%s1840_s16 + $0x78] sm:$0xff]  ;;  %v227_v25 = vmul.f32 %v1903_v18, %v1903_v18  ;;  %v1643_v31 = vld [vmem:[%s1930_s20 + $0x30] sm:$0xff]  ;;  %v230_v33 = vmul.f32 %v1937_v30, %v1937_v30  ;;  %v1641_v35 = vld [vmem:[%s1930_s20 + $0x20] sm:$0xff] }
  0x15   : > { %1340 = vst [vmem:[#allocation2 + $0x40] sm:$0xff] %v1869_v8  ;;  %v239_v27 = vmul.f32 %v1907_v19, %v1907_v19  ;;  %v1644_v28 = vld [vmem:[%s1930_s20 + $0x38] sm:$0xff]  ;;  %v1639_v37 = vld [vmem:[%s1930_s20 + $0x10] sm:$0xff]  ;;  %v1638_v38 = vld [vmem:[%s1930_s20 + $0x8] sm:$0xff] }
  0x16   : > { %1341 = vst [vmem:[#allocation2 + $0x48] sm:$0xff] %v1876_v10  ;;  %536 = vmatpush.bf16.msra.mxu0 %v1644_v28  ;;  %1646 = vmatpush.bf16.msra.mxu2 %v1644_v28  ;;  %v1934_v29 = vld [vmem:[%s1840_s16 + $0x38] sm:$0xff]  ;;  %v1637_v39 = vld [vmem:[%s1930_s20] sm:$0xff] }
  0x17   : > { %1349 = vst [vmem:[#allocation2 + $0xc8] sm:$0xff] %v1872_v9  ;;  %1645 = vmatpush.bf16.msra.mxu1 %v1644_v28  ;;  %1647 = vmatpush.bf16.msra.mxu3 %v1644_v28  ;;  %v231_v32 = vmul.f32 %v1934_v29, %v1934_v29  ;;  %v1640_v36 = vld [vmem:[%s1930_s20 + $0x18] sm:$0xff] }
  0x18   : > { %1346 = vst [vmem:[#allocation2 + $0xa0] sm:$0xff] %v1887_v14 }
  0x19   : > { %1347 = vst [vmem:[#allocation2 + $0xa8] sm:$0xff] %v1891_v15 }
  0x1a   : > { %258 = vadd.xlane.f32.xlu0 %v233_v11  ;;  %1338 = vst [vmem:[#allocation2 + $0x20] sm:$0xff] %v1895_v16  ;;  %537 = vmatpush.bf16.msra.mxu0 %v1643_v31 }
  0x1b   : > { %242 = vadd.xlane.f32.xlu1 %v225_v12  ;;  %1350 = vst [vmem:[#allocation2 + $0xe0] sm:$0xff] %v1899_v17  ;;  %1649 = vmatpush.bf16.msra.mxu2 %v1643_v31 }
  0x1c   : > { %266 = vadd.xlane.f32.xlu2 %v237_v13  ;;  %1339 = vst [vmem:[#allocation2 + $0x28] sm:$0xff] %v1903_v18  ;;  %1648 = vmatpush.bf16.msra.mxu1 %v1643_v31 }
  0x1d   : > { %1351 = vst [vmem:[#allocation2 + $0xe8] sm:$0xff] %v1907_v19  ;;  %1650 = vmatpush.bf16.msra.mxu3 %v1643_v31 }
  0x1e   : > { %1343 = vst [vmem:[#allocation2 + $0x68] sm:$0xff] %v1934_v29  ;;  %538 = vmatpush.bf16.msra.mxu0 %v1642_v34 }
  0x1f   : > { %1342 = vst [vmem:[#allocation2 + $0x60] sm:$0xff] %v1937_v30  ;;  %1652 = vmatpush.bf16.msra.mxu2 %v1642_v34 }
  0x20   : > { %1651 = vmatpush.bf16.msra.mxu1 %v1642_v34 }
  0x21   : > { %1653 = vmatpush.bf16.msra.mxu3 %v1642_v34 }
  0x22   : > { %248 = vadd.xlane.f32.xlu0 %v228_v20  ;;  %539 = vmatpush.bf16.msra.mxu0 %v1641_v35 }
  0x23   : > { %250 = vadd.xlane.f32.xlu1 %v229_v21  ;;  %1655 = vmatpush.bf16.msra.mxu2 %v1641_v35 }
  0x24   : > { %260 = vadd.xlane.f32.xlu2 %v234_v22  ;;  %1654 = vmatpush.bf16.msra.mxu1 %v1641_v35 }
  0x25   : > { %1656 = vmatpush.bf16.msra.mxu3 %v1641_v35 }
  0x26   : > { %540 = vmatpush.bf16.msra.mxu0 %v1640_v36 }
  0x27   : > { %1658 = vmatpush.bf16.msra.mxu2 %v1640_v36 }
  0x28   : > { %1657 = vmatpush.bf16.msra.mxu1 %v1640_v36 }
  0x29   : > { %1659 = vmatpush.bf16.msra.mxu3 %v1640_v36 }
  0x2a   : > { %262 = vadd.xlane.f32.xlu0 %v235_v23  ;;  %541 = vmatpush.bf16.msra.mxu0 %v1639_v37 }
  0x2b   : > { %244 = vadd.xlane.f32.xlu1 %v226_v24  ;;  %1661 = vmatpush.bf16.msra.mxu2 %v1639_v37 }
  0x2c   : > { %246 = vadd.xlane.f32.xlu2 %v227_v25  ;;  %1660 = vmatpush.bf16.msra.mxu1 %v1639_v37 }
  0x2d   : > { %1662 = vmatpush.bf16.msra.mxu3 %v1639_v37 }
  0x2e   : > { %542 = vmatpush.bf16.msra.mxu0 %v1638_v38 }
  0x2f   : > { %1664 = vmatpush.bf16.msra.mxu2 %v1638_v38 }
  0x30   : > { %1663 = vmatpush.bf16.msra.mxu1 %v1638_v38 }
  0x31   : > { %1665 = vmatpush.bf16.msra.mxu3 %v1638_v38 }
  0x32   : > { %268 = vadd.xlane.f32.xlu0 %v238_v26  ;;  %543 = vmatpush.bf16.msra.mxu0 %v1637_v39 }
  0x33   : > { %270 = vadd.xlane.f32.xlu1 %v239_v27  ;;  %1667 = vmatpush.bf16.msra.mxu2 %v1637_v39 }
  0x34   : > { %252 = vadd.xlane.f32.xlu2 %v230_v33  ;;  %1666 = vmatpush.bf16.msra.mxu1 %v1637_v39 }
  0x35   : > { %1668 = vmatpush.bf16.msra.mxu3 %v1637_v39 }
  0x3a   : > { %254 = vadd.xlane.f32.xlu0 %v231_v32 }
  0x85   : > { %v257_v40 = vpop.xlane.xlu0 %256 }
  0x86   : > { %v241_v41 = vpop.xlane.xlu1 %240  ;;  %v280_v42 = vmax.f32 %v257_v40, 1e-24 }
  0x87   : > { %v1952_v43 = vmax.f32 %v241_v41, 1e-24  ;;  %v265_v44 = vpop.xlane.xlu2 %264 }
  0x88   : > { %v284_v45 = vmax.f32 %v265_v44, 1e-24  ;;  %1725 = vrsqrt.f32 %v280_v42  ;;  %vm374_vm2 = vweird.f32 %v280_v42 }
  0x89   : > { %1727 = vrsqrt.f32 %v1952_v43  ;;  %vm294_vm5 = vweird.f32 %v1952_v43 }
  0x8a   : > { %1729 = vrsqrt.f32 %v284_v45  ;;  %vm414_vm0 = vweird.f32 %v284_v45 }
  0x8d   : > { %v259_v46 = vpop.xlane.xlu0 %258 }
  0x8e   : > { %v243_v47 = vpop.xlane.xlu1 %242  ;;  %v1955_v48 = vpop.eup %1725  ;;  %v281_v49 = vmax.f32 %v259_v46, 1e-24 }
  0x8f   : > { %v1957_v50 = vmax.f32 %v243_v47, 1e-24  ;;  %v267_v51 = vpop.xlane.xlu2 %266  ;;  %v1959_v52 = vpop.eup %1727  ;;  %v369_v53 = vmul.f32 %v1955_v48, %v280_v42  ;;  %vm375_vm3 = vweird.f32 %v1955_v48 }
  0x90   : > { %v1962_v54 = vmax.f32 %v267_v51, 1e-24  ;;  %v1964_v55 = vpop.eup %1729  ;;  %v289_v56 = vmul.f32 %v1959_v52, %v1952_v43  ;;  %1731 = vrsqrt.f32 %v281_v49  ;;  %vm295_vm4 = vweird.f32 %v1959_v52  ;;  %vm1994_vm8 = vmor %vm374_vm2, %vm375_vm3 }
  0x91   : > { %v370_v57 = vmul.f32 %v1955_v48, %v369_v53  ;;  %1733 = vrsqrt.f32 %v1957_v50  ;;  %v409_v58 = vmul.f32 %v1964_v55, %v284_v45  ;;  %vm415_vm1 = vweird.f32 %v1964_v55  ;;  %vm2001_vm11 = vmor %vm294_vm5, %vm295_vm4 }
  0x92   : > { %v290_v59 = vmul.f32 %v1959_v52, %v289_v56  ;;  %1735 = vrsqrt.f32 %v1962_v54  ;;  %vm1989_vm7 = vmor %vm414_vm0, %vm415_vm1  ;;  %vm424_vm9 = vweird.f32 %v1962_v54  ;;  %vm384_vm12 = vweird.f32 %v281_v49 }
  0x93   : > { %v371_v60 = vmul.f32 0.5, %v370_v57  ;;  %v410_v61 = vmul.f32 %v1964_v55, %v409_v58  ;;  %vm304_vm15 = vweird.f32 %v1957_v50 }
  0x94   : > { %v291_v62 = vmul.f32 0.5, %v290_v59 }
  0x95   : > { %v411_v63 = vmul.f32 0.5, %v410_v61  ;;  %v249_v2 = vpop.xlane.xlu0 %248  ;;  %v372_v11 = vsub.f32 1.5, %v371_v60 }
  0x96   : > { %v251_v3 = vpop.xlane.xlu1 %250  ;;  %v1732_v6 = vpop.eup %1731  ;;  %v1974_v12 = vmax.f32 %v249_v2, 1e-24  ;;  %v292_v24 = vsub.f32 1.5, %v291_v62 }
  0x97   : > { %v1976_v13 = vmax.f32 %v251_v3, 1e-24  ;;  %v1734_v20 = vpop.eup %1733  ;;  %v379_v21 = vmul.f32 %v1732_v6, %v281_v49  ;;  %v412_v22 = vsub.f32 1.5, %v411_v63  ;;  %v373_v31 = vmul.f32 %v1955_v48, %v372_v11 }
  0x98   : > { %v1736_v23 = vpop.eup %1735  ;;  %v299_v25 = vmul.f32 %v1734_v20, %v1957_v50  ;;  %1737 = vrsqrt.f32 %v1974_v12  ;;  %vm385_vm6 = vweird.f32 %v1732_v6  ;;  %v293_v37 = vmul.f32 %v1959_v52, %v292_v24 }
  0x99   : > { %v380_v26 = vmul.f32 %v1732_v6, %v379_v21  ;;  %1739 = vrsqrt.f32 %v1976_v13  ;;  %v419_v27 = vmul.f32 %v1736_v23, %v1962_v54  ;;  %v413_v34 = vmul.f32 %v1964_v55, %v412_v22  ;;  %vm2009_vm14 = vmor %vm384_vm12, %vm385_vm6 }
  0x9a   : > { %v300_v28 = vmul.f32 %v1734_v20, %v299_v25  ;;  %vm425_vm10 = vweird.f32 %v1736_v23  ;;  %vm305_vm13 = vweird.f32 %v1734_v20  ;;  %v377_v44 = vsel %vm1994_vm8, %v1955_v48, %v373_v31 }
  0x9b   : > { %v381_v32 = vmul.f32 0.5, %v380_v26  ;;  %v420_v33 = vmul.f32 %v1736_v23, %v419_v27  ;;  %v417_v49 = vsel %vm1989_vm7, %v1964_v55, %v413_v34  ;;  %vm2022_vm0 = vmor %vm424_vm9, %vm425_vm10  ;;  %v297_v57 = vsel %vm2001_vm11, %v1959_v52, %v293_v37 }
  0x9c   : > { %v301_v35 = vmul.f32 0.5, %v300_v28  ;;  %vm306_vm1 = vmor %vm304_vm15, %vm305_vm13  ;;  %v456_v50 = vmul.f32 %v377_v44, %v1843_v0  ;;  %v460_v63 = vmul.f32 %v417_v49, %v1854_v4  ;;  %v448_v3 = vmul.f32 %v297_v57, %v1846_v1 }
  0x9d   : > { %v382_v39 = vsub.f32 1.5, %v381_v32  ;;  %v421_v40 = vmul.f32 0.5, %v420_v33  ;;  %v263_v4 = vpop.xlane.xlu0 %262  ;;  %vm334_vm4 = vweird.f32 %v1974_v12  ;;  %vm344_vm6 = vweird.f32 %v1976_v13 }
  0x9e   : > { %v1738_v41 = vpop.eup %1737  ;;  %v302_v43 = vsub.f32 1.5, %v301_v35  ;;  %v245_v25 = vpop.xlane.xlu1 %244  ;;  %v283_v33 = vmax.f32 %v263_v4, 1e-24 }
  0x9f   : > { %v1740_v45 = vpop.eup %1739  ;;  %v329_v47 = vmul.f32 %v1738_v41, %v1974_v12  ;;  %v422_v51 = vsub.f32 1.5, %v421_v40  ;;  %v383_v53 = vmul.f32 %v1732_v6, %v382_v39  ;;  %vm335_vm2 = vweird.f32 %v1738_v41 }
  0xa0   : > { %v339_v56 = vmul.f32 %v1740_v45, %v1976_v13  ;;  %v303_v58 = vmul.f32 %v1734_v20, %v302_v43  ;;  %vm345_vm3 = vweird.f32 %v1740_v45  ;;  %vm336_vm5 = vmor %vm334_vm4, %vm335_vm2  ;;  %v274_v35 = vmax.f32 %v245_v25, 1e-24 }
  0xa1   : > { %v330_v59 = vmul.f32 %v1738_v41, %v329_v47  ;;  %v387_v55 = vsel %vm2009_vm14, %v1732_v6, %v383_v53  ;;  %v423_v60 = vmul.f32 %v1736_v23, %v422_v51  ;;  %vm346_vm7 = vmor %vm344_vm6, %vm345_vm3  ;;  %vm404_vm10 = vweird.f32 %v283_v33 }
  0xa2   : > { %v340_v61 = vmul.f32 %v1740_v45, %v339_v56  ;;  %v307_v62 = vsel %vm306_vm1, %v1734_v20, %v303_v58  ;;  %v457_v54 = vmul.f32 %v387_v55, %v1858_v5  ;;  %vm314_vm12 = vweird.f32 %v274_v35 }
  0xa3   : > { %v331_v2 = vmul.f32 0.5, %v330_v59  ;;  %v449_v52 = vmul.f32 %v307_v62, %v1864_v7  ;;  %v427_v11 = vsel %vm2022_vm0, %v1736_v23, %v423_v60  ;;  %v261_v7 = vpop.xlane.xlu2 %260 }
  0xa4   : > { %v341_v21 = vmul.f32 0.5, %v340_v61  ;;  %v468_v22 = vpack.c.bf16 %v457_v54, %v456_v50  ;;  %v461_v6 = vmul.f32 %v427_v11, %v1872_v9  ;;  %v282_v32 = vmax.f32 %v261_v7, 1e-24 }
  0xa5   : > { %v332_v0 = vsub.f32 1.5, %v331_v2  ;;  %v464_v24 = vpack.c.bf16 %v449_v52, %v448_v3  ;;  %v269_v12 = vpop.xlane.xlu0 %268 }
  0xa6   : > { %v342_v20 = vsub.f32 1.5, %v341_v21  ;;  %564 = vmatmul.bf16.vlgmr.msra.gmra.mxu2 %v468_v22  ;;  %v470_v5 = vpack.c.bf16 %v461_v6, %v460_v63  ;;  %v271_v36 = vpop.xlane.xlu1 %270  ;;  %v286_v37 = vmax.f32 %v269_v12, 1e-24  ;;  %1741 = vrsqrt.f32 %v282_v32 }
  0xa7   : > { %544 = vmatmul.bf16.vlgmr.msra.gmra.mxu0 %v464_v24  ;;  %v333_v1 = vmul.f32 %v1738_v41, %v332_v0  ;;  %1743 = vrsqrt.f32 %v283_v33  ;;  %v287_v38 = vmax.f32 %v271_v36, 1e-24  ;;  %vm394_vm8 = vweird.f32 %v282_v32 }
  0xa8   : > { %v343_v23 = vmul.f32 %v1740_v45, %v342_v20  ;;  %574 = vmatmul.bf16.vlgmr.msra.gmra.mxu3 %v470_v5  ;;  %1745 = vrsqrt.f32 %v274_v35  ;;  %vm434_vm2 = vweird.f32 %v286_v37 }
  0xa9   : > { %v337_v9 = vsel %vm336_vm5, %v1738_v41, %v333_v1  ;;  %1747 = vrsqrt.f32 %v286_v37  ;;  %vm444_vm5 = vweird.f32 %v287_v38 }
  0xaa   : > { %v347_v26 = vsel %vm346_vm7, %v1740_v45, %v343_v23  ;;  %v452_v27 = vmul.f32 %v337_v9, %v1869_v8 }
  0xab   : > { %v453_v28 = vmul.f32 %v347_v26, %v1876_v10  ;;  %v247_v34 = vpop.xlane.xlu2 %246 }
  0xac   : > { %v275_v13 = vmax.f32 %v247_v34, 1e-24  ;;  %v1742_v8 = vpop.eup %1741 }
  0xad   : > { %v466_v31 = vpack.c.bf16 %v453_v28, %v452_v27  ;;  %v1744_v39 = vpop.eup %1743  ;;  %v389_v43 = vmul.f32 %v1742_v8, %v282_v32  ;;  %vm395_vm9 = vweird.f32 %v1742_v8 }
  0xae   : > { %1749 = vrsqrt.f32 %v275_v13  ;;  %v1746_v10 = vpop.eup %1745  ;;  %v399_v44 = vmul.f32 %v1744_v39, %v283_v33  ;;  %vm405_vm11 = vweird.f32 %v1744_v39  ;;  %vm324_vm14 = vweird.f32 %v275_v13  ;;  %vm2051_vm15 = vmor %vm394_vm8, %vm395_vm9 }
  0xaf   : > { %554 = vmatmul.bf16.vlgmr.msra.gmra.mxu1 %v466_v31  ;;  %1751 = vrsqrt.f32 %v287_v38  ;;  %v2043_v40 = vpop.eup %1747  ;;  %v309_v45 = vmul.f32 %v1746_v10, %v274_v35  ;;  %v390_v53 = vmul.f32 %v1742_v8, %v389_v43  ;;  %vm315_vm13 = vweird.f32 %v1746_v10  ;;  %vm2055_vm1 = vmor %vm404_vm10, %vm405_vm11 }
  0xb0   : > { %v429_v47 = vmul.f32 %v2043_v40, %v286_v37  ;;  %v400_v49 = vmul.f32 %v1744_v39, %v399_v44  ;;  %vm435_vm3 = vweird.f32 %v2043_v40  ;;  %vm2060_vm4 = vmor %vm314_vm12, %vm315_vm13 }
  0xb1   : > { %v310_v56 = vmul.f32 %v1746_v10, %v309_v45  ;;  %v391_v59 = vmul.f32 0.5, %v390_v53  ;;  %vm2069_vm8 = vmor %vm434_vm2, %vm435_vm3 }
  0xb2   : > { %v430_v57 = vmul.f32 %v2043_v40, %v429_v47  ;;  %v401_v55 = vmul.f32 0.5, %v400_v49 }
  0xb3   : > { %v311_v50 = vmul.f32 0.5, %v310_v56  ;;  %v392_v54 = vsub.f32 1.5, %v391_v59 }
  0xb4   : > { %v1750_v41 = vpop.eup %1749  ;;  %v431_v61 = vmul.f32 0.5, %v430_v57  ;;  %v402_v2 = vsub.f32 1.5, %v401_v55 }
  0xb5   : > { %v2045_v42 = vpop.eup %1751  ;;  %v319_v46 = vmul.f32 %v1750_v41, %v275_v13  ;;  %v312_v3 = vsub.f32 1.5, %v311_v50  ;;  %vm325_vm0 = vweird.f32 %v1750_v41  ;;  %v393_v20 = vmul.f32 %v1742_v8, %v392_v54 }
  0xb6   : > { %v439_v51 = vmul.f32 %v2045_v42, %v287_v38  ;;  %v432_v21 = vsub.f32 1.5, %v431_v61  ;;  %vm445_vm6 = vweird.f32 %v2045_v42  ;;  %vm2065_vm7 = vmor %vm324_vm14, %vm325_vm0  ;;  %v403_v5 = vmul.f32 %v1744_v39, %v402_v2 }
  0xb7   : > { %v320_v48 = vmul.f32 %v1750_v41, %v319_v46  ;;  %v313_v4 = vmul.f32 %v1746_v10, %v312_v3  ;;  %vm2073_vm9 = vmor %vm444_vm5, %vm445_vm6  ;;  %v397_v9 = vsel %vm2051_vm15, %v1742_v8, %v393_v20  ;;  %vm585_vm0 = vcmask 130048  }
  0xb8   : > { %v440_v58 = vmul.f32 %v2045_v42, %v439_v51  ;;  %v433_v23 = vmul.f32 %v2043_v40, %v432_v21  ;;  %v407_v26 = vsel %vm2055_vm1, %v1744_v39, %v403_v5  ;;  %v458_v31 = vmul.f32 %v397_v9, %v1887_v14 }
  0xb9   : > { %v321_v60 = vmul.f32 0.5, %v320_v48  ;;  %v317_v27 = vsel %vm2060_vm4, %v1746_v10, %v313_v4  ;;  %v459_v32 = vmul.f32 %v407_v26, %v1891_v15  ;;  %vm1245_vm5 = vcmask 1041409  }
  0xba   : > { %v441_v62 = vmul.f32 0.5, %v440_v58  ;;  %v450_v12 = vmul.f32 %v317_v27, %v1895_v16  ;;  %v437_v34 = vsel %vm2069_vm8, %v2043_v40, %v433_v23  ;;  %v255_v16 = vpop.xlane.xlu0 %254  ;;  %vm1248_vm6 = vcmask 1042434  }
  0xbb   : > { %v322_v52 = vsub.f32 1.5, %v321_v60  ;;  %v469_v36 = vpack.c.bf16 %v459_v32, %v458_v31  ;;  %v462_v13 = vmul.f32 %v437_v34, %v1899_v17  ;;  %v279_v38 = vmax.f32 %v255_v16, 1e-24 }
  0xbc   : > { %v442_v22 = vsub.f32 1.5, %v441_v62  ;;  %vm1254_vm8 = vcmask 1044484  }
  0xbd   : > { %v323_v1 = vmul.f32 %v1750_v41, %v322_v52  ;;  %569 = vmatmul.bf16.gmra.mxu2 %v469_v36  ;;  %1753 = vrsqrt.f32 %v279_v38  ;;  %vm364_vm10 = vweird.f32 %v279_v38 }
  0xbe   : > { %v443_v25 = vmul.f32 %v2045_v42, %v442_v22 }
  0xbf   : > { %v327_v28 = vsel %vm2065_vm7, %v1750_v41, %v323_v1  ;;  %vm1251_vm7 = vcmask 1043459  }
  0xc0   : > { %v451_v33 = vmul.f32 %v327_v28, %v1903_v18  ;;  %v447_v35 = vsel %vm2073_vm9, %v2045_v42, %v443_v25  ;;  %v253_v18 = vpop.xlane.xlu2 %252  ;;  %vm1257_vm9 = vcmask 1045509  }
  0xc1   : > { %v463_v14 = vmul.f32 %v447_v35, %v1907_v19  ;;  %v278_v8 = vmax.f32 %v253_v18, 1e-24 }
  0xc2   : > { %v465_v37 = vpack.c.bf16 %v451_v33, %v450_v12 }
  0xc3   : > { %v471_v15 = vpack.c.bf16 %v463_v14, %v462_v13  ;;  %1755 = vrsqrt.f32 %v278_v8  ;;  %v1754_v39 = vpop.eup %1753  ;;  %vm354_vm12 = vweird.f32 %v278_v8 }
  0xc4   : > { %549 = vmatmul.bf16.gmra.mxu0 %v465_v37  ;;  %v359_v40 = vmul.f32 %v1754_v39, %v279_v38  ;;  %vm365_vm11 = vweird.f32 %v1754_v39 }
  0xc5   : > { %579 = vmatmul.bf16.gmra.mxu3 %v471_v15  ;;  %vm366_vm14 = vmor %vm364_vm10, %vm365_vm11  ;;  %vm1260_vm10 = vcmask 1046534   ;;  %vm1263_vm11 = vcmask 1047559  }
  0xc6   : > { %v360_v42 = vmul.f32 %v1754_v39, %v359_v40 }
  0xc8   : > { %v361_v44 = vmul.f32 0.5, %v360_v42 }
  0xc9   : > { %v1756_v10 = vpop.eup %1755 }
  0xca   : > { %v349_v41 = vmul.f32 %v1756_v10, %v278_v8  ;;  %vm355_vm13 = vweird.f32 %v1756_v10  ;;  %v362_v19 = vsub.f32 1.5, %v361_v44 }
  0xcb   : > { %vm356_vm15 = vmor %vm354_vm12, %vm355_vm13 }
  0xcc   : > { %v350_v43 = vmul.f32 %v1756_v10, %v349_v41  ;;  %v363_v46 = vmul.f32 %v1754_v39, %v362_v19 }
  0xce   : > { %v351_v17 = vmul.f32 0.5, %v350_v43  ;;  %v367_v51 = vsel %vm366_vm14, %v1754_v39, %v363_v46 }
  0xcf   : > { %v455_v49 = vmul.f32 %v367_v51, %v1934_v29 }
  0xd0   : > { %v352_v45 = vsub.f32 1.5, %v351_v17 }
  0xd2   : > { %v353_v47 = vmul.f32 %v1756_v10, %v352_v45 }
  0xd4   : > { %v357_v53 = vsel %vm356_vm15, %v1756_v10, %v353_v47 }
  0xd5   : > { %v454_v56 = vmul.f32 %v357_v53, %v1937_v30 }
  0xd7   : > { %v467_v48 = vpack.c.bf16 %v455_v49, %v454_v56 }
  0xd9   : > { %559 = vmatmul.bf16.gmra.mxu1 %v467_v48 }
 0x124   : > { %v545_v57 = vpop.f32.mrf.mxu0 }
 0x125   : > { %v2102_v58 = vsel %vm585_vm0, %v545_v57, 0.0 }
 0x126   : > { %v610_v59 = vrot.slane %v2102_v58, 1  ;;  %v730_v61 = vrot.slane %v2102_v58, 4  ;;  %v690_v62 = vrot.slane %v2102_v58, 3  ;;  %v650_v54 = vrot.slane %v2102_v58, 2 }
 0x127   : > { %v850_v52 = vrot.slane %v2102_v58, 7  ;;  %v810_v11 = vrot.slane %v2102_v58, 6  ;;  %v770_v21 = vrot.slane %v2102_v58, 5 }
 0x128   : > { %618 = vrot.lane.b32.xlu1 %v610_v59, %s1783_s21 }
 0x129   : > { %v565_v22 = vpop.f32.mrf.mxu2 }
 0x12a   : > { %v2134_v0 = vsel %vm585_vm0, %v565_v22, 0.0 }
 0x12b   : > { %v575_v6 = vpop.f32.mrf.mxu3  ;;  %v614_v5 = vrot.slane %v2134_v0, 1  ;;  %v654_v1 = vrot.slane %v2134_v0, 2  ;;  %v734_v9 = vrot.slane %v2134_v0, 4  ;;  %v694_v26 = vrot.slane %v2134_v0, 3 }
 0x12c   : > { %v555_v55 = vpop.f32.mrf.mxu1  ;;  %v2137_v24 = vsel %vm585_vm0, %v575_v6, 0.0  ;;  %v774_v28 = vrot.slane %v2134_v0, 5  ;;  %v814_v31 = vrot.slane %v2134_v0, 6  ;;  %v547_v35 = vpop.f32.mrf.mxu0  ;;  %v854_v37 = vrot.slane %v2134_v0, 7 }
 0x12d   : > { %v2107_v50 = vsel %vm585_vm0, %v555_v55, 0.0  ;;  %v616_v20 = vrot.slane %v2137_v24, 1  ;;  %v696_v7 = vrot.slane %v2137_v24, 3  ;;  %v656_v23 = vrot.slane %v2137_v24, 2 }
 0x12e   : > { %v692_v29 = vrot.slane %v2107_v50, 3  ;;  %v652_v30 = vrot.slane %v2107_v50, 2  ;;  %v612_v60 = vrot.slane %v2107_v50, 1  ;;  %v852_v63 = vrot.slane %v2107_v50, 7 }
 0x12f   : > { %v772_v2 = vrot.slane %v2107_v50, 5  ;;  %v732_v3 = vrot.slane %v2107_v50, 4  ;;  %v812_v4 = vrot.slane %v2107_v50, 6  ;;  %v736_v25 = vrot.slane %v2137_v24, 4 }
 0x130   : > { %702 = vrot.lane.b32.xlu2 %v692_v29, %s1784_s22  ;;  %662 = vrot.lane.b32.xlu1 %v652_v30, %s1785_s23  ;;  %v816_v27 = vrot.slane %v2137_v24, 6  ;;  %v776_v33 = vrot.slane %v2137_v24, 5  ;;  %v2173_v36 = vsel %vm585_vm0, %v547_v35, 0.0  ;;  %v856_v16 = vrot.slane %v2137_v24, 7 }
 0x131   : > { %622 = vrot.lane.b32.xlu0 %v612_v60, %s1783_s21  ;;  %v970_v13 = vrot.slane %v2173_v36, 2  ;;  %v567_v18 = vpop.f32.mrf.mxu2  ;;  %v930_v38 = vrot.slane %v2173_v36, 1  ;;  %v1010_v44 = vrot.slane %v2173_v36, 3  ;;  %v1050_v45 = vrot.slane %v2173_v36, 4 }
 0x132   : > { %v2189_v8 = vsel %vm585_vm0, %v567_v18, 0.0 }
 0x133   : > { %v577_v10 = vpop.f32.mrf.mxu3  ;;  %v1014_v19 = vrot.slane %v2189_v8, 3  ;;  %v934_v46 = vrot.slane %v2189_v8, 1 }
 0x134   : > { %v557_v32 = vpop.f32.mrf.mxu1  ;;  %v2197_v41 = vsel %vm585_vm0, %v577_v10, 0.0 }
 0x135   : > { %v2164_v12 = vsel %vm585_vm0, %v557_v32, 0.0  ;;  %v936_v42 = vrot.slane %v2197_v41, 1  ;;  %v976_v48 = vrot.slane %v2197_v41, 2  ;;  %v1016_v6 = vrot.slane %v2197_v41, 3 }
 0x136   : > { %v972_v34 = vrot.slane %v2164_v12, 2  ;;  %v1092_v14 = vrot.slane %v2164_v12, 5  ;;  %v932_v15 = vrot.slane %v2164_v12, 1  ;;  %v1012_v39 = vrot.slane %v2164_v12, 3 }
 0x137   : > { %v1052_v43 = vrot.slane %v2164_v12, 4 }
 0x138   : > { %738 = vrot.lane.b32.xlu2 %v730_v61, %s1786_s24  ;;  %698 = vrot.lane.b32.xlu1 %v690_v62, %s1784_s22  ;;  %v974_v62 = vrot.slane %v2189_v8, 2 }
 0x139   : > { %658 = vrot.lane.b32.xlu0 %v650_v54, %s1785_s23 }
 0x140   : > { %862 = vrot.lane.b32.xlu2 %v852_v63, %s1787_s25  ;;  %782 = vrot.lane.b32.xlu1 %v772_v2, %s1788_s26  ;;  %v1054_v63 = vrot.slane %v2189_v8, 4 }
 0x141   : > { %742 = vrot.lane.b32.xlu0 %v732_v3, %s1786_s24  ;;  %v550_v47 = vpop.f32.mrf.mxu0 }
 0x142   : > { %v2214_v49 = vsel %vm585_vm0, %v550_v47, 0.0 }
 0x143   : > { %v611_v56 = vrot.slane %v2214_v49, 1  ;;  %v731_v35 = vrot.slane %v2214_v49, 4 }
 0x148   : > { %858 = vrot.lane.b32.xlu2 %v850_v52, %s1787_s25  ;;  %818 = vrot.lane.b32.xlu1 %v810_v11, %s1789_s27 }
 0x149   : > { %778 = vrot.lane.b32.xlu0 %v770_v21, %s1788_s26 }
 0x150   : > { %630 = vrot.lane.b32.xlu2 %v616_v20, %s1783_s21  ;;  %626 = vrot.lane.b32.xlu1 %v614_v5, %s1783_s21  ;;  %v651_v20 = vrot.slane %v2214_v49, 2 }
 0x151   : > { %822 = vrot.lane.b32.xlu0 %v812_v4, %s1789_s27 }
 0x156   : > { %v560_v57 = vpop.f32.mrf.mxu1 }
 0x157   : > { %v2223_v29 = vsel %vm585_vm0, %v560_v57, 0.0  ;;  %v851_v57 = vrot.slane %v2214_v49, 7 }
 0x158   : > { %666 = vrot.lane.b32.xlu2 %v654_v1, %s1785_s23  ;;  %710 = vrot.lane.b32.xlu1 %v696_v7, %s1784_s22  ;;  %v613_v54 = vrot.slane %v2223_v29, 1  ;;  %v653_v5 = vrot.slane %v2223_v29, 2 }
 0x159   : > { %670 = vrot.lane.b32.xlu0 %v656_v23, %s1785_s23 }
 0x160   : > { %750 = vrot.lane.b32.xlu2 %v736_v25, %s1786_s24  ;;  %746 = vrot.lane.b32.xlu1 %v734_v9, %s1786_s24  ;;  %v693_v9 = vrot.slane %v2223_v29, 3 }
 0x161   : > { %706 = vrot.lane.b32.xlu0 %v694_v26, %s1784_s22  ;;  %v733_v26 = vrot.slane %v2223_v29, 4 }
 0x168   : > { %830 = vrot.lane.b32.xlu2 %v816_v27, %s1789_s27  ;;  %786 = vrot.lane.b32.xlu1 %v774_v28, %s1788_s26  ;;  %v691_v27 = vrot.slane %v2214_v49, 3 }
 0x169   : > { %826 = vrot.lane.b32.xlu0 %v814_v31, %s1789_s27 }
 0x170   : > { %790 = vrot.lane.b32.xlu1 %v776_v33, %s1788_s26  ;;  %982 = vrot.lane.b32.xlu2 %v972_v34, %s1790_s28 }
 0x171   : > { %902 = vrot.lane.b32.xlu0 %v2164_v12, %s1791_s29 }
 0x178   : > { %866 = vrot.lane.b32.xlu1 %v854_v37, %s1787_s25  ;;  %978 = vrot.lane.b32.xlu2 %v970_v13, %s1790_s28  ;;  %v771_v37 = vrot.slane %v2214_v49, 5  ;;  %v773_v13 = vrot.slane %v2223_v29, 5 }
 0x179   : > { %898 = vrot.lane.b32.xlu0 %v2173_v36, %s1791_s29 }
 0x180   : > { %1102 = vrot.lane.b32.xlu2 %v1092_v14, %s1792_s30  ;;  %942 = vrot.lane.b32.xlu1 %v932_v15, %s1793_s3 }
 0x181   : > { %870 = vrot.lane.b32.xlu0 %v856_v16, %s1787_s25 }
 0x188   : > { %906 = vrot.lane.b32.xlu2 %v2189_v8, %s1791_s29  ;;  %938 = vrot.lane.b32.xlu1 %v930_v38, %s1793_s3 }
 0x189   : > { %1022 = vrot.lane.b32.xlu0 %v1012_v39, %s1794_s4 }
 0x18a   : > { %v703_v40 = vpop.permute.xlu2 %702 }
 0x190   : > { %950 = vrot.lane.b32.xlu2 %v936_v42, %s1793_s3  ;;  %1062 = vrot.lane.b32.xlu1 %v1052_v43, %s1795_s5  ;;  %v811_v42 = vrot.slane %v2214_v49, 6 }
 0x191   : > { %1018 = vrot.lane.b32.xlu0 %v1010_v44, %s1794_s4  ;;  %v813_v44 = vrot.slane %v2223_v29, 6 }
 0x192   : > { %v739_v17 = vpop.permute.xlu2 %738 }
 0x198   : > { %1026 = vrot.lane.b32.xlu2 %v1014_v19, %s1794_s4  ;;  %1058 = vrot.lane.b32.xlu1 %v1050_v45, %s1795_s5 }
 0x199   : > { %946 = vrot.lane.b32.xlu0 %v934_v46, %s1793_s3  ;;  %v570_v46 = vpop.f32.mrf.mxu2 }
 0x19a   : > { %v2211_v51 = vpop.permute.xlu2 %862  ;;  %v619_v53 = vpop.permute.xlu1 %618 }
 0x19b   : > { %v642_v3 = vadd.f32 %v619_v53, %v2102_v58 }
 0x1a0   : > { %910 = vrot.lane.b32.xlu1 %v2197_v41, %s1791_s29  ;;  %620 = vrot.lane.b32.xlu2 %v611_v56, %s1783_s21 }
 0x1a1   : > { %990 = vrot.lane.b32.xlu0 %v976_v48, %s1790_s28 }
 0x1a2   : > { %v859_v59 = vpop.permute.xlu2 %858  ;;  %v663_v55 = vpop.permute.xlu1 %662 }
 0x1a3   : > { %v623_v30 = vpop.permute.xlu0 %622 }
 0x1a4   : > { %v644_v60 = vadd.f32 %v623_v30, %v2107_v50 }
 0x1a6   : > { %v684_v61 = vadd.f32 %v663_v55, %v644_v60 }
 0x1a8   : > { %986 = vrot.lane.b32.xlu1 %v974_v62, %s1790_s28  ;;  %624 = vrot.lane.b32.xlu2 %v613_v54, %s1783_s21  ;;  %v724_v2 = vadd.f32 %v703_v40, %v684_v61  ;;  %v853_v40 = vrot.slane %v2223_v29, 7 }
 0x1a9   : > { %1066 = vrot.lane.b32.xlu0 %v1054_v63, %s1795_s5 }
 0x1aa   : > { %v631_v52 = vpop.permute.xlu2 %630  ;;  %v699_v11 = vpop.permute.xlu1 %698 }
 0x1ab   : > { %v659_v21 = vpop.permute.xlu0 %658  ;;  %v648_v19 = vadd.f32 %v631_v52, %v2137_v24 }
 0x1ac   : > { %v682_v50 = vadd.f32 %v659_v21, %v642_v3 }
 0x1ae   : > { %v722_v22 = vadd.f32 %v699_v11, %v682_v50 }
 0x1b0   : > { %1030 = vrot.lane.b32.xlu1 %v1016_v6, %s1794_s4  ;;  %660 = vrot.lane.b32.xlu2 %v651_v20, %s1785_s23  ;;  %v762_v4 = vadd.f32 %v739_v17, %v722_v22  ;;  %v580_v17 = vpop.f32.mrf.mxu3 }
 0x1b1   : > { %664 = vrot.lane.b32.xlu0 %v653_v5, %s1785_s23  ;;  %v2265_v47 = vsel %vm585_vm0, %v580_v17, 0.0 }
 0x1b2   : > { %v667_v1 = vpop.permute.xlu2 %666  ;;  %v783_v58 = vpop.permute.xlu1 %782  ;;  %v657_v63 = vrot.slane %v2265_v47, 2  ;;  %v697_v3 = vrot.slane %v2265_v47, 3  ;;  %v737_v20 = vrot.slane %v2265_v47, 4  ;;  %v857_v17 = vrot.slane %v2265_v47, 7 }
 0x1b3   : > { %v743_v7 = vpop.permute.xlu0 %742 }
 0x1b4   : > { %v764_v23 = vadd.f32 %v743_v7, %v724_v2 }
 0x1b6   : > { %v804_v25 = vadd.f32 %v783_v58, %v764_v23 }
 0x1b8   : > { %704 = vrot.lane.b32.xlu1 %v693_v9, %s1784_s22  ;;  %744 = vrot.lane.b32.xlu2 %v733_v26, %s1786_s24  ;;  %v777_v26 = vrot.slane %v2265_v47, 5 }
 0x1b9   : > { %700 = vrot.lane.b32.xlu0 %v691_v27, %s1784_s22 }
 0x1ba   : > { %v751_v28 = vpop.permute.xlu2 %750  ;;  %v819_v31 = vpop.permute.xlu1 %818 }
 0x1bb   : > { %v779_v32 = vpop.permute.xlu0 %778 }
 0x1bc   : > { %v802_v33 = vadd.f32 %v779_v32, %v762_v4 }
 0x1be   : > { %v842_v34 = vadd.f32 %v819_v31, %v802_v33 }
 0x1c0   : > { %740 = vrot.lane.b32.xlu1 %v731_v35, %s1786_s24  ;;  %780 = vrot.lane.b32.xlu2 %v771_v37, %s1788_s26  ;;  %v2250_v14 = vadd.f32 %v859_v59, %v842_v34  ;;  %v617_v59 = vrot.slane %v2265_v47, 1  ;;  %v552_v35 = vpop.f32.mrf.mxu0 }
 0x1c1   : > { %784 = vrot.lane.b32.xlu0 %v773_v13, %s1788_s26  ;;  %v817_v13 = vrot.slane %v2265_v47, 6 }
 0x1c2   : > { %v831_v15 = vpop.permute.xlu2 %830  ;;  %v627_v16 = vpop.permute.xlu1 %626 }
 0x1c3   : > { %v823_v18 = vpop.permute.xlu0 %822  ;;  %v646_v38 = vadd.f32 %v627_v16, %v2134_v0  ;;  %v2304_v16 = vsel %vm585_vm0, %v552_v35, 0.0 }
 0x1c4   : > { %v844_v39 = vadd.f32 %v823_v18, %v804_v25 }
 0x1c5   : > { %v686_v10 = vadd.f32 %v667_v1, %v646_v38 }
 0x1c6   : > { %v884_v43 = vadd.f32 %v2211_v51, %v844_v39  ;;  %v2268_v51 = vsel %vm585_vm0, %v570_v46, 0.0 }
 0x1c7   : > { %v615_v55 = vrot.slane %v2268_v51, 1  ;;  %v655_v2 = vrot.slane %v2268_v51, 2  ;;  %v695_v6 = vrot.slane %v2268_v51, 3  ;;  %v735_v5 = vrot.slane %v2268_v51, 4 }
 0x1c8   : > { %864 = vrot.lane.b32.xlu1 %v853_v40, %s1787_s25  ;;  %820 = vrot.lane.b32.xlu2 %v811_v42, %s1789_s27  ;;  %v775_v9 = vrot.slane %v2268_v51, 5  ;;  %v815_v27 = vrot.slane %v2268_v51, 6 }
 0x1c9   : > { %824 = vrot.lane.b32.xlu0 %v813_v44, %s1789_s27 }
 0x1ca   : > { %v2262_v0 = vpop.permute.xlu2 %982  ;;  %v711_v45 = vpop.permute.xlu1 %710 }
 0x1cb   : > { %v671_v53 = vpop.permute.xlu0 %670 }
 0x1cc   : > { %v688_v56 = vadd.f32 %v671_v53, %v648_v19 }
 0x1ce   : > { %v728_v48 = vadd.f32 %v711_v45, %v688_v56 }
 0x1d0   : > { %860 = vrot.lane.b32.xlu2 %v851_v57, %s1787_s25  ;;  %632 = vrot.lane.b32.xlu1 %v617_v59, %s1783_s21  ;;  %v768_v24 = vadd.f32 %v751_v28, %v728_v48  ;;  %v971_v48 = vrot.slane %v2304_v16, 2 }
 0x1d1   : > { %628 = vrot.lane.b32.xlu0 %v615_v55, %s1783_s21 }
 0x1d2   : > { %v2276_v30 = vpop.permute.xlu2 %978  ;;  %v747_v60 = vpop.permute.xlu1 %746 }
 0x1d3   : > { %v707_v61 = vpop.permute.xlu0 %706 }
 0x1d4   : > { %v726_v62 = vadd.f32 %v707_v61, %v686_v10  ;;  %v562_v10 = vpop.f32.mrf.mxu1 }
 0x1d5   : > { %v2315_v44 = vsel %vm585_vm0, %v562_v10, 0.0 }
 0x1d6   : > { %v766_v54 = vadd.f32 %v747_v60, %v726_v62  ;;  %v973_v57 = vrot.slane %v2315_v44, 2  ;;  %v933_v59 = vrot.slane %v2315_v44, 1 }
 0x1d8   : > { %672 = vrot.lane.b32.xlu2 %v657_v63, %s1785_s23  ;;  %668 = vrot.lane.b32.xlu1 %v655_v2, %s1785_s23  ;;  %v1051_v63 = vrot.slane %v2304_v16, 4  ;;  %v1011_v2 = vrot.slane %v2304_v16, 3 }
 0x1d9   : > { %712 = vrot.lane.b32.xlu0 %v697_v3, %s1784_s22 }
 0x1da   : > { %v2284_v52 = vpop.permute.xlu2 %1102  ;;  %v787_v11 = vpop.permute.xlu1 %786 }
 0x1db   : > { %v827_v21 = vpop.permute.xlu0 %826  ;;  %v806_v50 = vadd.f32 %v787_v11, %v766_v54 }
 0x1dd   : > { %v846_v22 = vadd.f32 %v827_v21, %v806_v50 }
 0x1e0   : > { %708 = vrot.lane.b32.xlu2 %v695_v6, %s1784_s22  ;;  %752 = vrot.lane.b32.xlu1 %v737_v20, %s1786_s24  ;;  %v582_v6 = vpop.f32.mrf.mxu3 }
 0x1e1   : > { %748 = vrot.lane.b32.xlu0 %v735_v5, %s1786_s24  ;;  %v1091_v5 = vrot.slane %v2304_v16, 5 }
 0x1e2   : > { %v907_v4 = vpop.permute.xlu2 %906  ;;  %v791_v1 = vpop.permute.xlu1 %790 }
 0x1e3   : > { %v903_v58 = vpop.permute.xlu0 %902  ;;  %v808_v7 = vadd.f32 %v791_v1, %v768_v24  ;;  %v1053_v1 = vrot.slane %v2315_v44, 4 }
 0x1e4   : > { %v924_v23 = vadd.f32 %v903_v58, %v884_v43  ;;  %v931_v43 = vrot.slane %v2304_v16, 1  ;;  %v572_v58 = vpop.f32.mrf.mxu2 }
 0x1e5   : > { %v848_v25 = vadd.f32 %v831_v15, %v808_v7  ;;  %v855_v15 = vrot.slane %v2268_v51, 7 }
 0x1e8   : > { %788 = vrot.lane.b32.xlu2 %v775_v9, %s1788_s26  ;;  %792 = vrot.lane.b32.xlu1 %v777_v26, %s1788_s26 }
 0x1e9   : > { %828 = vrot.lane.b32.xlu0 %v815_v27, %s1789_s27 }
 0x1ea   : > { %v2298_v28 = vpop.permute.xlu2 %950  ;;  %v867_v31 = vpop.permute.xlu1 %866 }
 0x1eb   : > { %v899_v32 = vpop.permute.xlu0 %898  ;;  %v886_v33 = vadd.f32 %v867_v31, %v846_v22 }
 0x1ec   : > { %v922_v34 = vadd.f32 %v899_v32, %v2250_v14 }
 0x1ed   : > { %v926_v37 = vadd.f32 %v907_v4, %v886_v33  ;;  %v2343_v4 = vsel %vm585_vm0, %v582_v6, 0.0 }
 0x1f0   : > { %832 = vrot.lane.b32.xlu2 %v817_v13, %s1789_s27  ;;  %868 = vrot.lane.b32.xlu1 %v855_v15, %s1787_s25  ;;  %v937_v15 = vrot.slane %v2343_v4, 1 }
 0x1f1   : > { %900 = vrot.lane.b32.xlu0 %v2304_v16, %s1791_s29 }
 0x1f2   : > { %v2310_v18 = vpop.permute.xlu2 %1026  ;;  %v943_v38 = vpop.permute.xlu1 %942 }
 0x1f3   : > { %v871_v14 = vpop.permute.xlu0 %870  ;;  %v964_v39 = vadd.f32 %v943_v38, %v924_v23  ;;  %v2351_v23 = vsel %vm585_vm0, %v572_v58, 0.0  ;;  %v977_v38 = vrot.slane %v2343_v4, 2  ;;  %v1171_v58 = vrot.slane %v2304_v16, 7 }
 0x1f4   : > { %v888_v40 = vadd.f32 %v871_v14, %v848_v25  ;;  %v975_v27 = vrot.slane %v2351_v23, 2  ;;  %v935_v31 = vrot.slane %v2351_v23, 1 }
 0x1f5   : > { %v1004_v42 = vadd.f32 %v2262_v0, %v964_v39 }
 0x1f8   : > { %904 = vrot.lane.b32.xlu2 %v2315_v44, %s1791_s29  ;;  %940 = vrot.lane.b32.xlu1 %v931_v43, %s1793_s3 }
 0x1f9   : > { %872 = vrot.lane.b32.xlu0 %v857_v17, %s1787_s25  ;;  %v1093_v17 = vrot.slane %v2315_v44, 5 }
 0x1fa   : > { %v621_v19 = vpop.permute.xlu2 %620  ;;  %v939_v45 = vpop.permute.xlu1 %938 }
 0x1fb   : > { %v1023_v46 = vpop.permute.xlu0 %1022  ;;  %v962_v53 = vadd.f32 %v939_v45, %v922_v34  ;;  %v643_v3 = vadd.f32 %v621_v19, %v2214_v49  ;;  %v1015_v19 = vrot.slane %v2351_v23, 3  ;;  %v1055_v45 = vrot.slane %v2351_v23, 4 }
 0x1fc   : > { %v1044_v56 = vadd.f32 %v1023_v46, %v1004_v42 }
 0x1fd   : > { %v1002_v0 = vadd.f32 %v2276_v30, %v962_v53  ;;  %v1013_v30 = vrot.slane %v2315_v44, 3 }
 0x200   : > { %980 = vrot.lane.b32.xlu2 %v971_v48, %s1790_s28  ;;  %984 = vrot.lane.b32.xlu1 %v973_v57, %s1790_s28  ;;  %v1094_v57 = vrot.slane %v2189_v8, 5 }
 0x201   : > { %944 = vrot.lane.b32.xlu0 %v933_v59, %s1793_s3  ;;  %v1090_v59 = vrot.slane %v2173_v36, 5 }
 0x202   : > { %v625_v55 = vpop.permute.xlu2 %624  ;;  %v1063_v24 = vpop.permute.xlu1 %1062 }
 0x203   : > { %v1019_v60 = vpop.permute.xlu0 %1018  ;;  %v1084_v61 = vadd.f32 %v1063_v24, %v1044_v56  ;;  %v645_v39 = vadd.f32 %v625_v55, %v2223_v29  ;;  %v1131_v55 = vrot.slane %v2304_v16, 6  ;;  %v1133_v16 = vrot.slane %v2315_v44, 6 }
 0x204   : > { %v1042_v62 = vadd.f32 %v1019_v60, %v1002_v0 }
 0x205   : > { %v2330_v54 = vadd.f32 %v2284_v52, %v1084_v61 }
 0x208   : > { %1024 = vrot.lane.b32.xlu2 %v1013_v30, %s1794_s4  ;;  %1060 = vrot.lane.b32.xlu1 %v1051_v63, %s1795_s5 }
 0x209   : > { %1020 = vrot.lane.b32.xlu0 %v1011_v2, %s1794_s4  ;;  %v1095_v2 = vrot.slane %v2351_v23, 5 }
 0x20a   : > { %v661_v11 = vpop.permute.xlu2 %660  ;;  %v1059_v21 = vpop.permute.xlu1 %1058 }
 0x20b   : > { %v947_v50 = vpop.permute.xlu0 %946  ;;  %v683_v22 = vadd.f32 %v661_v11, %v643_v3  ;;  %v2339_v52 = vadd.f32 %v1059_v21, %v1042_v62  ;;  %v1056_v3 = vrot.slane %v2197_v41, 4  ;;  %v1132_v11 = vrot.slane %v2164_v12, 6 }
 0x20c   : > { %v966_v20 = vadd.f32 %v947_v50, %v926_v37 }
 0x210   : > { %1100 = vrot.lane.b32.xlu2 %v1091_v5, %s1792_s30  ;;  %912 = vrot.lane.b32.xlu1 %v2343_v4, %s1791_s29 }
 0x211   : > { %1064 = vrot.lane.b32.xlu0 %v1053_v1, %s1795_s5 }
 0x212   : > { %v745_v49 = vpop.permute.xlu2 %744  ;;  %v911_v7 = vpop.permute.xlu1 %910 }
 0x213   : > { %v991_v25 = vpop.permute.xlu0 %990  ;;  %v928_v9 = vadd.f32 %v911_v7, %v888_v40  ;;  %v1130_v7 = vrot.slane %v2173_v36, 6 }
 0x215   : > { %v968_v26 = vadd.f32 %v2298_v28, %v928_v9  ;;  %v1017_v28 = vrot.slane %v2343_v4, 3 }
 0x217   : > { %v1008_v32 = vadd.f32 %v991_v25, %v968_v26 }
 0x218   : > { %908 = vrot.lane.b32.xlu2 %v2351_v23, %s1791_s29  ;;  %988 = vrot.lane.b32.xlu1 %v975_v27, %s1790_s28 }
 0x219   : > { %948 = vrot.lane.b32.xlu0 %v935_v31, %s1793_s3 }
 0x21a   : > { %v781_v33 = vpop.permute.xlu2 %780  ;;  %v987_v34 = vpop.permute.xlu1 %986 }
 0x21b   : > { %v1067_v35 = vpop.permute.xlu0 %1066  ;;  %v1006_v37 = vadd.f32 %v987_v34, %v966_v20 }
 0x21d   : > { %v1046_v13 = vadd.f32 %v2310_v18, %v1006_v37 }
 0x21f   : > { %v2364_v14 = vadd.f32 %v1067_v35, %v1046_v13 }
 0x220   : > { %1032 = vrot.lane.b32.xlu1 %v1017_v28, %s1794_s4  ;;  %952 = vrot.lane.b32.xlu2 %v937_v15, %s1793_s3 }
 0x221   : > { %992 = vrot.lane.b32.xlu0 %v977_v38, %s1790_s28  ;;  %v1134_v38 = vrot.slane %v2189_v8, 6 }
 0x222   : > { %v821_v10 = vpop.permute.xlu2 %820  ;;  %v1031_v40 = vpop.permute.xlu1 %1030 }
 0x223   : > { %v665_v42 = vpop.permute.xlu0 %664  ;;  %v2370_v18 = vadd.f32 %v1031_v40, %v1008_v32  ;;  %v1172_v32 = vrot.slane %v2164_v12, 7  ;;  %v1170_v12 = vrot.slane %v2173_v36, 7  ;;  %v1135_v36 = vrot.slane %v2351_v23, 6 }
 0x224   : > { %v685_v43 = vadd.f32 %v665_v42, %v645_v39  ;;  %v1097_v39 = vrot.slane %v2343_v4, 5 }
 0x228   : > { %1104 = vrot.lane.b32.xlu1 %v1093_v17, %s1792_s30  ;;  %1028 = vrot.lane.b32.xlu2 %v1015_v19, %s1794_s4  ;;  %v1174_v19 = vrot.slane %v2189_v8, 7  ;;  %v1136_v8 = vrot.slane %v2197_v41, 6 }
 0x229   : > { %1068 = vrot.lane.b32.xlu0 %v1055_v45, %s1795_s5 }
 0x22a   : > { %v861_v46 = vpop.permute.xlu2 %860  ;;  %v705_v29 = vpop.permute.xlu1 %704 }
 0x22b   : > { %v701_v53 = vpop.permute.xlu0 %700  ;;  %v725_v56 = vadd.f32 %v705_v29, %v685_v43 }
 0x22c   : > { %v723_v0 = vadd.f32 %v701_v53, %v683_v22 }
 0x22d   : > { %v765_v48 = vadd.f32 %v745_v49, %v725_v56  ;;  %v1057_v49 = vrot.slane %v2343_v4, 4 }
 0x230   : > { %1106 = vrot.lane.b32.xlu1 %v1094_v57, %s1792_s30  ;;  %1098 = vrot.lane.b32.xlu2 %v1090_v59, %s1792_s30  ;;  %v1176_v59 = vrot.slane %v2197_v41, 7 }
 0x231   : > { %1140 = vrot.lane.b32.xlu0 %v1131_v55, %s1796_s6  ;;  %v1137_v55 = vrot.slane %v2343_v4, 6 }
 0x232   : > { %v673_v24 = vpop.permute.xlu2 %672  ;;  %v741_v60 = vpop.permute.xlu1 %740 }
 0x233   : > { %v785_v61 = vpop.permute.xlu0 %784  ;;  %v763_v62 = vadd.f32 %v741_v60, %v723_v0 }
 0x234   : > { %v805_v30 = vadd.f32 %v785_v61, %v765_v48 }
 0x235   : > { %v803_v63 = vadd.f32 %v781_v33, %v763_v62  ;;  %v1096_v33 = vrot.slane %v2197_v41, 5 }
 0x237   : > { %v843_v21 = vadd.f32 %v821_v10, %v803_v63  ;;  %v1177_v63 = vrot.slane %v2343_v4, 7 }
 0x238   : > { %1108 = vrot.lane.b32.xlu1 %v1095_v2, %s1792_s30  ;;  %1070 = vrot.lane.b32.xlu2 %v1056_v3, %s1795_s5 }
 0x239   : > { %1142 = vrot.lane.b32.xlu0 %v1132_v11, %s1796_s6  ;;  %v2390_v50 = vadd.f32 %v861_v46, %v843_v21  ;;  %v1173_v46 = vrot.slane %v2315_v44, 7 }
 0x23a   : > { %v709_v22 = vpop.permute.xlu2 %708  ;;  %v865_v6 = vpop.permute.xlu1 %864 }
 0x23b   : > { %v825_v20 = vpop.permute.xlu0 %824 }
 0x23c   : > { %v845_v5 = vadd.f32 %v825_v20, %v805_v30  ;;  %v1175_v30 = vrot.slane %v2351_v23, 7 }
 0x23e   : > { %v885_v1 = vadd.f32 %v865_v6, %v845_v5 }
 0x240   : > { %1180 = vrot.lane.b32.xlu1 %v1171_v58, %s1797_s7  ;;  %1072 = vrot.lane.b32.xlu2 %v1057_v49, %s1795_s5 }
 0x241   : > { %1138 = vrot.lane.b32.xlu0 %v1130_v7, %s1796_s6 }
 0x242   : > { %v789_v25 = vpop.permute.xlu2 %788  ;;  %v633_v9 = vpop.permute.xlu1 %632 }
 0x243   : > { %v629_v26 = vpop.permute.xlu0 %628  ;;  %v649_v27 = vadd.f32 %v633_v9, %v2265_v47 }
 0x244   : > { %v647_v34 = vadd.f32 %v629_v26, %v2268_v51 }
 0x245   : > { %v689_v31 = vadd.f32 %v673_v24, %v649_v27 }
 0x248   : > { %1182 = vrot.lane.b32.xlu1 %v1172_v32, %s1797_s7  ;;  %1144 = vrot.lane.b32.xlu2 %v1133_v16, %s1796_s6 }
 0x249   : > { %1110 = vrot.lane.b32.xlu0 %v1096_v33, %s1792_s30 }
 0x24a   : > { %v833_v35 = vpop.permute.xlu2 %832  ;;  %v669_v37 = vpop.permute.xlu1 %668 }
 0x24b   : > { %v713_v13 = vpop.permute.xlu0 %712  ;;  %v687_v28 = vadd.f32 %v669_v37, %v647_v34 }
 0x24c   : > { %v729_v47 = vadd.f32 %v713_v13, %v689_v31 }
 0x24d   : > { %v727_v15 = vadd.f32 %v709_v22, %v687_v28 }
 0x250   : > { %1178 = vrot.lane.b32.xlu1 %v1170_v12, %s1797_s7  ;;  %1146 = vrot.lane.b32.xlu2 %v1134_v38, %s1796_s6 }
 0x251   : > { %1112 = vrot.lane.b32.xlu0 %v1097_v39, %s1792_s30 }
 0x252   : > { %v905_v51 = vpop.permute.xlu2 %904  ;;  %v753_v10 = vpop.permute.xlu1 %752 }
 0x253   : > { %v749_v40 = vpop.permute.xlu0 %748  ;;  %v925_v42 = vadd.f32 %v905_v51, %v885_v1  ;;  %v769_v43 = vadd.f32 %v753_v10, %v729_v47  ;;  %v1210_v51 = vlaneseq }
 0x254   : > { %v767_v17 = vadd.f32 %v749_v40, %v727_v15 }
 0x256   : > { %v807_v45 = vadd.f32 %v789_v25, %v767_v17 }
 0x258   : > { %1186 = vrot.lane.b32.xlu1 %v1174_v19, %s1797_s7  ;;  %1148 = vrot.lane.b32.xlu2 %v1135_v36, %s1796_s6 }
 0x259   : > { %1184 = vrot.lane.b32.xlu0 %v1173_v46, %s1797_s7 }
 0x25a   : > { %v981_v29 = vpop.permute.xlu2 %980  ;;  %v793_v53 = vpop.permute.xlu1 %792 }
 0x25b   : > { %v829_v56 = vpop.permute.xlu0 %828  ;;  %v809_v0 = vadd.f32 %v793_v53, %v769_v43 }
 0x25c   : > { %v847_v48 = vadd.f32 %v829_v56, %v807_v45 }
 0x25d   : > { %v849_v57 = vadd.f32 %v833_v35, %v809_v0 }
 0x260   : > { %1190 = vrot.lane.b32.xlu1 %v1176_v59, %s1797_s7  ;;  %1150 = vrot.lane.b32.xlu2 %v1136_v8, %s1796_s6 }
 0x261   : > { %1152 = vrot.lane.b32.xlu0 %v1137_v55, %s1796_s6 }
 0x262   : > { %v1025_v44 = vpop.permute.xlu2 %1024  ;;  %v869_v24 = vpop.permute.xlu1 %868 }
 0x263   : > { %v901_v60 = vpop.permute.xlu0 %900  ;;  %v887_v61 = vadd.f32 %v869_v24, %v847_v48 }
 0x264   : > { %v923_v62 = vadd.f32 %v901_v60, %v2390_v50 }
 0x268   : > { %1188 = vrot.lane.b32.xlu2 %v1175_v30, %s1797_s7 }
 0x269   : > { %1192 = vrot.lane.b32.xlu0 %v1177_v63, %s1797_s7 }
 0x26a   : > { %v1101_v41 = vpop.permute.xlu2 %1100  ;;  %v941_v2 = vpop.permute.xlu1 %940 }
 0x26b   : > { %v873_v3 = vpop.permute.xlu0 %872  ;;  %v963_v11 = vadd.f32 %v941_v2, %v923_v62 }
 0x26c   : > { %v889_v21 = vadd.f32 %v873_v3, %v849_v57 }
 0x26d   : > { %v1003_v22 = vadd.f32 %v981_v29, %v963_v11 }
 0x272   : > { %v909_v6 = vpop.permute.xlu2 %908  ;;  %v985_v20 = vpop.permute.xlu1 %984 }
 0x273   : > { %v945_v5 = vpop.permute.xlu0 %944  ;;  %v927_v1 = vadd.f32 %v909_v6, %v887_v61 }
 0x274   : > { %v965_v58 = vadd.f32 %v945_v5, %v925_v42  ;;  %v2433_v42 = vand.u32 127, %v1210_v51 }
 0x276   : > { %v1005_v50 = vadd.f32 %v985_v20, %v965_v58  ;;  %v1212_v43 = vsub.s32 16, %v2433_v42 }
 0x278   : > { %v1045_v49 = vadd.f32 %v1025_v44, %v1005_v50  ;;  %v1213_v45 = vcvt.s32.f32 %v1212_v43 }
 0x27a   : > { %v953_v23 = vpop.permute.xlu2 %952  ;;  %v1061_v7 = vpop.permute.xlu1 %1060  ;;  %1757 = vrcp.f32 %v1213_v45  ;;  %vm1219_vm1 = vweird.f32 %v1213_v45  ;;  %v1225_v60 = vand.u32 2147483648, %v1213_v45  ;;  %v1223_v62 = vand.u32 2147483647, %v1213_v45 }
 0x27b   : > { %v1021_v4 = vpop.permute.xlu0 %1020 }
 0x27c   : > { %v1043_v25 = vadd.f32 %v1021_v4, %v1003_v22  ;;  %v1226_v2 = vor.u32 1.1754944e-38, %v1225_v60  ;;  %vm1224_vm4 = vcmp.eq.f32.partialorder %v1223_v62, 8.507059e+37 }
 0x27e   : > { %v1083_v9 = vadd.f32 %v1061_v7, %v1043_v25 }
 0x280   : > { %v1123_v26 = vadd.f32 %v1101_v41, %v1083_v9  ;;  %v1758_v56 = vpop.eup %1757 }
 0x281   : > { %v1215_v0 = vmul.f32 %v1758_v56, %v1213_v45  ;;  %vm1220_vm2 = vweird.f32 %v1758_v56 }
 0x282   : > { %v913_v27 = vpop.permute.xlu1 %912  ;;  %v1029_v32 = vpop.permute.xlu2 %1028  ;;  %vm2436_vm3 = vmor %vm1219_vm1, %vm1220_vm2 }
 0x283   : > { %v1065_v31 = vpop.permute.xlu0 %1064  ;;  %v929_v16 = vadd.f32 %v913_v27, %v889_v21  ;;  %v1216_v59 = vsub.f32 1.0, %v1215_v0 }
 0x284   : > { %v1085_v33 = vadd.f32 %v1065_v31, %v1045_v49 }
 0x285   : > { %v1217_v55 = vmul.f32 %v1758_v56, %v1216_v59  ;;  %v969_v5 = vadd.f32 %v953_v23, %v929_v16 }
 0x287   : > { %v1218_v61 = vadd.f32 %v1758_v56, %v1217_v55 }
 0x289   : > { %v1222_v22 = vsel %vm2436_vm3, %v1758_v56, %v1218_v61 }
 0x28a   : > { %v989_v34 = vpop.permute.xlu1 %988  ;;  %v1099_v13 = vpop.permute.xlu2 %1098  ;;  %v1227_v4 = vsel %vm1224_vm4, %v1226_v2, %v1222_v22 }
 0x28b   : > { %v949_v35 = vpop.permute.xlu0 %948  ;;  %v1122_v63 = vadd.f32 %v1099_v13, %v2339_v52 }
 0x28c   : > { %v967_v37 = vadd.f32 %v949_v35, %v927_v1 }
 0x28e   : > { %v1007_v41 = vadd.f32 %v989_v34, %v967_v37 }
 0x290   : > { %v1047_v25 = vadd.f32 %v1029_v32, %v1007_v41 }
 0x292   : > { %v2429_v28 = vpop.permute.xlu1 %1032  ;;  %v1071_v15 = vpop.permute.xlu2 %1070 }
 0x293   : > { %v993_v47 = vpop.permute.xlu0 %992  ;;  %v1088_v49 = vadd.f32 %v1071_v15, %v2370_v18 }
 0x294   : > { %v1009_v27 = vadd.f32 %v993_v47, %v969_v5 }
 0x29a   : > { %v1105_v12 = vpop.permute.xlu1 %1104  ;;  %v2431_v39 = vpop.permute.xlu2 %1072 }
 0x29b   : > { %v1069_v38 = vpop.permute.xlu0 %1068  ;;  %v1125_v11 = vadd.f32 %v1105_v12, %v1085_v33 }
 0x29c   : > { %v1087_v35 = vadd.f32 %v1069_v38, %v1047_v25 }
 0x2a2   : > { %v1107_v10 = vpop.permute.xlu1 %1106  ;;  %v1145_v19 = vpop.permute.xlu2 %1144 }
 0x2a3   : > { %v1141_v40 = vpop.permute.xlu0 %1140  ;;  %v1165_v1 = vadd.f32 %v1145_v19, %v1125_v11  ;;  %v1126_v7 = vadd.f32 %v1107_v10, %v2364_v14  ;;  %v1049_v14 = vadd.f32 %v2429_v28, %v1009_v27 }
 0x2a4   : > { %v1163_v21 = vadd.f32 %v1141_v40, %v1123_v26 }
 0x2a5   : > { %v1089_v40 = vadd.f32 %v2431_v39, %v1049_v14 }
 0x2aa   : > { %v1109_v17 = vpop.permute.xlu1 %1108  ;;  %v1147_v53 = vpop.permute.xlu2 %1146 }
 0x2ab   : > { %v1143_v36 = vpop.permute.xlu0 %1142  ;;  %v1166_v31 = vadd.f32 %v1147_v53, %v1126_v7  ;;  %v1127_v16 = vadd.f32 %v1109_v17, %v1087_v35 }
 0x2ac   : > { %v1164_v52 = vadd.f32 %v1143_v36, %v2330_v54 }
 0x2b2   : > { %v1181_v46 = vpop.permute.xlu1 %1180  ;;  %v1149_v8 = vpop.permute.xlu2 %1148 }
 0x2b3   : > { %v1139_v29 = vpop.permute.xlu0 %1138  ;;  %v1203_v50 = vadd.f32 %v1181_v46, %v1163_v21  ;;  %v1167_v10 = vadd.f32 %v1149_v8, %v1127_v16 }
 0x2b4   : > { %v1162_v58 = vadd.f32 %v1139_v29, %v1122_v63 }
 0x2b5   : > { %v1229_v37 = vmul.f32 %v1227_v4, %v1203_v50 }
 0x2b7   : > { %v1244_v47 = vrot.slane %v1229_v37, 7 }
 0x2ba   : > { %v1183_v48 = vpop.permute.xlu1 %1182  ;;  %v1151_v3 = vpop.permute.xlu2 %1150 }
 0x2bb   : > { %v1111_v57 = vpop.permute.xlu0 %1110  ;;  %v1204_v34 = vadd.f32 %v1183_v48, %v1164_v52 }
 0x2bc   : > { %v1128_v33 = vadd.f32 %v1111_v57, %v1088_v49 }
 0x2bd   : > { %v1230_v54 = vmul.f32 %v1227_v4, %v1204_v34 }
 0x2be   : > { %v1168_v15 = vadd.f32 %v1151_v3, %v1128_v33 }
 0x2bf   : > { %v1247_v45 = vrot.slane %v1230_v54, 6 }
 0x2c2   : > { %v1179_v44 = vpop.permute.xlu1 %1178  ;;  %v1189_v51 = vpop.permute.xlu2 %1188 }
 0x2c3   : > { %v1113_v24 = vpop.permute.xlu0 %1112  ;;  %v1202_v9 = vadd.f32 %v1179_v44, %v1162_v58  ;;  %v1207_v19 = vadd.f32 %v1189_v51, %v1167_v10 }
 0x2c4   : > { %v1129_v28 = vadd.f32 %v1113_v24, %v1089_v40  ;;  %v1798_v40 = vmov 0.0  }
 0x2c5   : > { %v2446_v13 = vmul.f32 %v1227_v4, %v1202_v9  ;;  %v1233_v56 = vmul.f32 %v1227_v4, %v1207_v19  ;;  %1352 = vst [vmem:[#allocation2 + $0x10] sm:$0xff] %v1798_v40 }
 0x2c6   : > { %1353 = vst [vmem:[#allocation2 + $0x18] sm:$0xff] %v1798_v40 }
 0x2c7   : > { %v1246_v17 = vsel %vm1245_vm5, %v1244_v47, %v2446_v13  ;;  %v1256_v55 = vrot.slane %v1233_v56, 3  ;;  %1354 = vst [vmem:[#allocation2 + $0x30] sm:$0xff] %v1798_v40 }
 0x2c8   : > { %v1249_v46 = vsel %vm1248_vm6, %v1247_v45, %v1246_v17  ;;  %1355 = vst [vmem:[#allocation2 + $0x38] sm:$0xff] %v1798_v40 }
 0x2c9   : > { %1356 = vst [vmem:[#allocation2 + $0x50] sm:$0xff] %v1798_v40 }
 0x2ca   : > { %v1187_v6 = vpop.permute.xlu1 %1186  ;;  %1357 = vst [vmem:[#allocation2 + $0x58] sm:$0xff] %v1798_v40 }
 0x2cb   : > { %v1185_v20 = vpop.permute.xlu0 %1184  ;;  %v1206_v23 = vadd.f32 %v1187_v6, %v1166_v31  ;;  %1358 = vst [vmem:[#allocation2 + $0x70] sm:$0xff] %v1798_v40 }
 0x2cc   : > { %v1205_v26 = vadd.f32 %v1185_v20, %v1165_v1  ;;  %1359 = vst [vmem:[#allocation2 + $0x78] sm:$0xff] %v1798_v40 }
 0x2cd   : > { %v1232_v43 = vmul.f32 %v1227_v4, %v1206_v23  ;;  %1360 = vst [vmem:[#allocation2 + $0x90] sm:$0xff] %v1798_v40 }
 0x2ce   : > { %v1231_v12 = vmul.f32 %v1227_v4, %v1205_v26  ;;  %1361 = vst [vmem:[#allocation2 + $0x98] sm:$0xff] %v1798_v40 }
 0x2cf   : > { %v1253_v29 = vrot.slane %v1232_v43, 4  ;;  %1362 = vst [vmem:[#allocation2 + $0xb0] sm:$0xff] %v1798_v40 }
 0x2d0   : > { %v1250_v36 = vrot.slane %v1231_v12, 5  ;;  %1363 = vst [vmem:[#allocation2 + $0xb8] sm:$0xff] %v1798_v40 }
 0x2d1   : > { %1364 = vst [vmem:[#allocation2 + $0xd0] sm:$0xff] %v1798_v40 }
 0x2d2   : > { %v1191_v18 = vpop.permute.xlu1 %1190  ;;  %v1252_v0 = vsel %vm1251_vm7, %v1250_v36, %v1249_v46  ;;  %1365 = vst [vmem:[#allocation2 + $0xd8] sm:$0xff] %v1798_v40 }
 0x2d3   : > { %v1153_v32 = vpop.permute.xlu0 %1152  ;;  %v1208_v38 = vadd.f32 %v1191_v18, %v1168_v15  ;;  %v1255_v8 = vsel %vm1254_vm8, %v1253_v29, %v1252_v0  ;;  %1366 = vst [vmem:[#allocation2 + $0xf0] sm:$0xff] %v1798_v40 }
 0x2d4   : > { %v1169_v48 = vadd.f32 %v1153_v32, %v1129_v28  ;;  %v1258_v60 = vsel %vm1257_vm9, %v1256_v55, %v1255_v8  ;;  %1367 = vst [vmem:[#allocation2 + $0xf8] sm:$0xff] %v1798_v40 }
 0x2d5   : > { %v1234_v53 = vmul.f32 %v1227_v4, %v1208_v38 }
 0x2d7   : > { %v1259_v59 = vrot.slane %v1234_v53, 2 }
 0x2d9   : > { %v1261_v61 = vsel %vm1260_vm10, %v1259_v59, %v1258_v60 }
 0x2db   : > { %v1193_v39 = vpop.permute.xlu0 %1192 }
 0x2dc   : > { %v1209_v57 = vadd.f32 %v1193_v39, %v1169_v48 }
 0x2de   : > { %v1235_v44 = vmul.f32 %v1227_v4, %v1209_v57 }
 0x2e0   : > { %v1262_v24 = vrot.slane %v1235_v44, 1 }
 0x2e2   : > { %v1264_v62 = vsel %vm1263_vm11, %v1262_v24, %v1261_v61 }
 0x2e3   : > { %v1266_v30 = vsel %vm585_vm0, %v1264_v62, -inf }
 0x2e4   : > { %1267 = vmax.xlane.f32.xlu2 %v1266_v30 }
 0x357   : > { %v1268_v63 = vpop.xlane.xlu2 %1267 }
 0x358   : > { %v1270_v41 = vrot.slane %v1268_v63, 1  ;;  %v1271_v2 = vrot.slane %v1268_v63, 2  ;;  %v1272_v3 = vrot.slane %v1268_v63, 3  ;;  %v1273_v11 = vrot.slane %v1268_v63, 4 }
 0x359   : > { %v1274_v21 = vrot.slane %v1268_v63, 5  ;;  %v1275_v22 = vrot.slane %v1268_v63, 6  ;;  %v1276_v6 = vrot.slane %v1268_v63, 7  ;;  %vm1285_vm12 = vcmp.eq.f32.partialorder %v2446_v13, %v1268_v63 }
 0x35a   : > { %vm1286_vm13 = vcmp.eq.f32.partialorder %v1229_v37, %v1270_v41  ;;  %vm1287_vm14 = vcmp.eq.f32.partialorder %v1230_v54, %v1271_v2  ;;  %vm1288_vm15 = vcmp.eq.f32.partialorder %v1231_v12, %v1272_v3  ;;  %vm1289_vm1 = vcmp.eq.f32.partialorder %v1232_v43, %v1273_v11 }
 0x35b   : > { %v1294_v20 = vsel %vm1286_vm13, %v2433_v42, 4294967295  ;;  %v1295_v5 = vsel %vm1287_vm14, %v2433_v42, 4294967295  ;;  %vm2462_vm2 = vcmp.eq.f32.partialorder %v1233_v56, %v1274_v21  ;;  %vm1291_vm3 = vcmp.eq.f32.partialorder %v1234_v53, %v1275_v22 }
 0x35c   : > { %v1301_v58 = vrot.slane %v1294_v20, 7  ;;  %v1303_v50 = vrot.slane %v1295_v5, 6  ;;  %vm2466_vm4 = vcmp.eq.f32.partialorder %v1235_v44, %v1276_v6  ;;  %v1293_v7 = vsel %vm1285_vm12, %v2433_v42, 4294967295 }
 0x35d   : > { %v1296_v52 = vsel %vm1288_vm15, %v2433_v42, 4294967295  ;;  %v1297_v4 = vsel %vm1289_vm1, %v2433_v42, 4294967295  ;;  %v1298_v25 = vsel %vm2462_vm2, %v2433_v42, 4294967295  ;;  %v1299_v9 = vsel %vm1291_vm3, %v2433_v42, 4294967295 }
 0x35e   : > { %v1302_v26 = vsel %vm1245_vm5, %v1301_v58, %v1293_v7  ;;  %v1305_v27 = vrot.slane %v1296_v52, 5  ;;  %v1300_v31 = vsel %vm2466_vm4, %v2433_v42, 4294967295  ;;  %v1307_v34 = vrot.slane %v1297_v4, 4 }
 0x35f   : > { %v1304_v33 = vsel %vm1248_vm6, %v1303_v50, %v1302_v26  ;;  %v1309_v37 = vrot.slane %v1298_v25, 3  ;;  %v1311_v16 = vrot.slane %v1299_v9, 2  ;;  %v1313_v12 = vrot.slane %v1300_v31, 1 }
 0x360   : > { %v1306_v35 = vsel %vm1251_vm7, %v1305_v27, %v1304_v33  ;;  %vm1334_vm6 = vcmask 7168  }
 0x361   : > { %v1308_v23 = vsel %vm1254_vm8, %v1307_v34, %v1306_v35 }
 0x362   : > { %v1310_v13 = vsel %vm1257_vm9, %v1309_v37, %v1308_v23 }
 0x363   : > { %v1312_v18 = vsel %vm1260_vm10, %v1311_v16, %v1310_v13 }
 0x364   : > { %v1314_v14 = vsel %vm1263_vm11, %v1313_v12, %v1312_v18 }
 0x365   : > { %v1315_v15 = vsel %vm585_vm0, %v1314_v14, 2147483648 }
 0x366   : > { %v1317_v54 = vshra.s32 %v1315_v15, 16  ;;  %v1316_v51 = vand.u32 65535, %v1315_v15 }
 0x368   : > { %v1319_v42 = vcvt.s32.f32 %v1317_v54  ;;  %v1318_v10 = vcvt.s32.f32 %v1316_v51 }
 0x36a   : > { %1320 = vmax.xlane.f32.xlu1 %v1319_v42 }
 0x3dd   : > { %v1321_v32 = vpop.xlane.xlu1 %1320 }
 0x3de   : > { %vm1322_vm5 = vcmp.eq.f32.partialorder %v1319_v42, %v1321_v32  ;;  %v1327_v43 = vcvt.f32.s32 %v1321_v32 }
 0x3df   : > { %v1323_v47 = vsel %vm1322_vm5, %v1318_v10, -inf }
 0x3e0   : > { %1324 = vmax.xlane.f32.xlu0 %v1323_v47  ;;  %v1328_v19 = vshll.u32 %v1327_v43, 16 }
 0x453   : > { %v1325_v38 = vpop.xlane.xlu0 %1324 }
 0x454   : > { %v1326_v17 = vcvt.f32.s32 %v1325_v38 }
 0x456   : > { %v1329_v36 = vadd.s32 %v1328_v19, %v1326_v17 }
 0x458   : > { %vm1330_vm0 = vcmp.gt.s32.totalorder %v1329_v36, 0 }
 0x459   : > { %v1331_v45 = vsel %vm1330_vm0, %v1329_v36, 0 }
 0x45a   : > { %vm1332_vm7 = vcmp.lt.s32.totalorder %v1331_v45, 15 }
 0x45b   : > { %v1333_v28 = vsel %vm1332_vm7, %v1331_v45, 15 }
 0x45c   : > { %1335 = vst.msk [vmem:[#allocation3] sm:$0xff] %vm1334_vm6, %v1333_v28 }
 0x463   : > { %v1368_v46 = vld [vmem:[#allocation3] sm:$0x1]  ;;  %v1375_v29 = vld [vmem:[#allocation3 + $0x1] sm:$0x1]  ;;  %v1384_v53 = vld [vmem:[#allocation3 + $0x2] sm:$0x1] }
 0x464   : > { %1669 = vpush %v1368_v46  ;;  %v1393_v56 = vld [vmem:[#allocation3 + $0x3] sm:$0x1]  ;;  %v1402_v0 = vld [vmem:[#allocation3 + $0x4] sm:$0x1]  ;;  %v1411_v48 = vld [vmem:[#allocation3 + $0x5] sm:$0x1] }
 0x465   : > { %1671 = vpush %v1375_v29  ;;  %v1420_v39 = vld [vmem:[#allocation3 + $0x6] sm:$0x1]  ;;  %v1429_v57 = vld [vmem:[#allocation3 + $0x7] sm:$0x1] }
 0x466   : > { %1673 = vpush %v1384_v53 }
 0x467   : > { %1675 = vpush %v1393_v56 }
 0x468   : > { %1677 = vpush %v1402_v0 }
 0x469   : > { %1679 = vpush %v1411_v48 }
 0x46a   : > { %1681 = vpush %v1420_v39 }
 0x46b   : > { %1683 = vpush %v1429_v57 }
 0x495   : > { %s1670_s16 = spop %1669 }
 0x496   : > { %s1672_s17 = spop %1671  ;;  %s1370_s18 = scalar_lea.vmem [#allocation2], %s1670_s16 }
 0x497   : > { %v1371_v59 = vld [vmem:[%s1370_s18] sm:$0xff]  ;;  %v1372_v8 = vld [vmem:[%s1370_s18 + $0x8] sm:$0xff]  ;;  %s1674_s19 = spop %1673  ;;  %s1502_s20 = scalar_lea.vmem [#allocation2], %s1672_s17 }
 0x498   : > { %1373 = vst [vmem:[%s2493_s15] sm:$0xff] %v1371_v59  ;;  %v1604_v55 = vld [vmem:[%s1502_s20 + $0x20] sm:$0xff]  ;;  %v1605_v44 = vld [vmem:[%s1502_s20 + $0x28] sm:$0xff]  ;;  %s1676_s9 = spop %1675  ;;  %s1504_s13 = scalar_lea.vmem [#allocation2], %s1674_s19 }
 0x499   : > { %1374 = vst [vmem:[%s2493_s15 + $0x8] sm:$0xff] %v1372_v8  ;;  %v1608_v24 = vld [vmem:[%s1504_s13 + $0x40] sm:$0xff]  ;;  %s1678_s21 = spop %1677  ;;  %v1609_v60 = vld [vmem:[%s1504_s13 + $0x48] sm:$0xff]  ;;  %s1506_s23 = scalar_lea.vmem [#allocation2], %s1676_s9 }
 0x49a   : > { %1606 = vst [vmem:[%s2493_s15 + $0x10] sm:$0xff] %v1604_v55  ;;  %s1680_s22 = spop %1679  ;;  %v1612_v61 = vld [vmem:[%s1506_s23 + $0x60] sm:$0xff]  ;;  %v1613_v62 = vld [vmem:[%s1506_s23 + $0x68] sm:$0xff]  ;;  %s1508_s25 = scalar_lea.vmem [#allocation2], %s1678_s21 }
 0x49b   : > { %1607 = vst [vmem:[%s2493_s15 + $0x18] sm:$0xff] %v1605_v44  ;;  %s1682_s24 = spop %1681  ;;  %v1616_v30 = vld [vmem:[%s1508_s25 + $0x80] sm:$0xff]  ;;  %v1617_v63 = vld [vmem:[%s1508_s25 + $0x88] sm:$0xff]  ;;  %s1510_s27 = scalar_lea.vmem [#allocation2], %s1680_s22 }
 0x49c   : > { %1610 = vst [vmem:[%s2493_s15 + $0x20] sm:$0xff] %v1608_v24  ;;  %s1684_s26 = spop %1683  ;;  %v1620_v41 = vld [vmem:[%s1510_s27 + $0xa0] sm:$0xff]  ;;  %v1621_v2 = vld [vmem:[%s1510_s27 + $0xa8] sm:$0xff]  ;;  %s1512_s28 = scalar_lea.vmem [#allocation2], %s1682_s24 }
 0x49d   : > { %1611 = vst [vmem:[%s2493_s15 + $0x28] sm:$0xff] %v1609_v60  ;;  %v1624_v3 = vld [vmem:[%s1512_s28 + $0xc0] sm:$0xff]  ;;  %v1625_v11 = vld [vmem:[%s1512_s28 + $0xc8] sm:$0xff]  ;;  %s1514_s29 = scalar_lea.vmem [#allocation2], %s1684_s26 }
 0x49e   : > { %1614 = vst [vmem:[%s2493_s15 + $0x30] sm:$0xff] %v1612_v61  ;;  %v1628_v21 = vld [vmem:[%s1514_s29 + $0xe0] sm:$0xff]  ;;  %v1629_v22 = vld [vmem:[%s1514_s29 + $0xe8] sm:$0xff] }
 0x49f   : > { %1615 = vst [vmem:[%s2493_s15 + $0x38] sm:$0xff] %v1613_v62 }
 0x4a0   : > { %1618 = vst [vmem:[%s2493_s15 + $0x40] sm:$0xff] %v1616_v30 }
 0x4a1   : > { %1619 = vst [vmem:[%s2493_s15 + $0x48] sm:$0xff] %v1617_v63 }
 0x4a2   : > { %1622 = vst [vmem:[%s2493_s15 + $0x50] sm:$0xff] %v1620_v41 }
 0x4a3   : > { %1623 = vst [vmem:[%s2493_s15 + $0x58] sm:$0xff] %v1621_v2 }
 0x4a4   : > { %1626 = vst [vmem:[%s2493_s15 + $0x60] sm:$0xff] %v1624_v3 }
 0x4a5   : > { %1627 = vst [vmem:[%s2493_s15 + $0x68] sm:$0xff] %v1625_v11 }
 0x4a6   : > { %1630 = vst [vmem:[%s2493_s15 + $0x70] sm:$0xff] %v1628_v21 }
 0x4a7   : > { %1631 = vst [vmem:[%s2493_s15 + $0x78] sm:$0xff] %v1629_v22 }
 0x4a8 PF: > { %s12_s11 = sadd.s32 1, %s1781_s11   ;;  %s2551_s9 = smov %s1777_s10 }
 0x4a9   : > { %p9_p5 = scmp.ge.s32.totalorder %s12_s11, 4   ;;  %s2552_s10 = smov %s2554_s12 }
 0x4ab   :  { %11 = sbr.rel (!%p9_p5) target bundleno = 2 (0x2), region = 76 }

</bundles_post_ra>
